<compile_context>
chip_gen: v6e
topology: v6e:2x2x1
jax: 0.10.0
libtpu: 0.0.40
codegen_flags: <defaults>
</compile_context>

<pallas_src>
import jax
import jax.numpy as jnp
from jax.experimental import pallas as pl
from jax.experimental.pallas import tpu as pltpu

# Logical sizes of the PyTorch module.
IN_FEATURES = 28 * 28     # 784
HIDDEN = 512
OUT_FEATURES = 10

# Padded output width: full lane width -> unmasked stores, full MXU N tile.
OUT_PAD = 128


def mlp_kernel(x_ref, w1_ref, b1_ref, w2_ref, b2_ref, w3_ref, b3_ref, o_ref):
    # x tile: [TB, 784] bf16; weights bf16 stored (in, out); biases f32.
    x = x_ref[...]
    h1 = jnp.dot(x, w1_ref[...], preferred_element_type=jnp.float32) + b1_ref[...]
    h1 = jnp.maximum(h1, 0.0).astype(jnp.bfloat16)
    h2 = jnp.dot(h1, w2_ref[...], preferred_element_type=jnp.float32) + b2_ref[...]
    h2 = jnp.maximum(h2, 0.0).astype(jnp.bfloat16)
    h3 = jnp.dot(h2, w3_ref[...], preferred_element_type=jnp.float32) + b3_ref[...]
    o_ref[...] = h3.astype(jnp.bfloat16)   # bf16 writeback (lane-dense, 128 wide)


def _round_up(n, m):
    return ((n + m - 1) // m) * m


def _choose_tb(B, block_b):
    """Pick the batch tile size.

    Small batches: one tile (multiple of 16 for bf16 sublane packing).
    Large batches: multiple of 256 (MXU M tile on v6e/v7x, also x128 for v5e),
    capped at 1024 and at half the padded batch so the grid has >= 2 steps
    (lets v7x's two TensorCores both get a batch shard).
    """
    b16 = _round_up(max(B, 1), 16)
    if b16 <= 256:
        return b16
    b256 = _round_up(B, 256)
    desired = min(_round_up(max(block_b, 256), 256), 1024)
    half = max(256, (b256 // 2) // 256 * 256)
    return min(desired, half)


def _prepare_params(params):
    """Cast weights to bf16; pad only the 10-wide output dim to 128 lanes."""
    w1, b1, w2, b2, w3, b3 = params
    w1p = w1.astype(jnp.bfloat16)                              # (784, 512)
    w2p = w2.astype(jnp.bfloat16)                              # (512, 512)
    w3p = jnp.pad(w3.astype(jnp.bfloat16),
                  ((0, 0), (0, OUT_PAD - OUT_FEATURES)))       # (512, 128)
    b3p = jnp.pad(b3, ((0, 0), (0, OUT_PAD - OUT_FEATURES)))   # (1, 128)
    return w1p, b1, w2p, b2, w3p, b3p


def neural_network_forward(x_nchw, params, *, block_b=512):
    """x_nchw: [B, 1, 28, 28] float32 -> logits [B, 10] float32."""
    B = x_nchw.shape[0]
    x_flat = x_nchw.reshape(B, -1).astype(jnp.bfloat16)        # nn.Flatten

    tb = _choose_tb(B, block_b)
    b_pad = _round_up(B, tb)

    # Batch padding only (fusible jnp.pad; no zeros+scatter pre-pass, no K pad).
    x_p = jnp.pad(x_flat, ((0, b_pad - B), (0, 0))) if b_pad != B else x_flat

    w1p, b1, w2p, b2, w3p, b3p = _prepare_params(params)

    const = lambda i: (0, 0)      # weights/biases: same block every grid step
    resident = pl.Buffered(1)     # constant blocks -> single VMEM buffer

    out = pl.pallas_call(
        mlp_kernel,
        out_shape=jax.ShapeDtypeStruct((b_pad, OUT_PAD), jnp.bfloat16),
        grid=(b_pad // tb,),
        in_specs=[
            pl.BlockSpec((tb, IN_FEATURES), lambda i: (i, 0)),            # x tile
            pl.BlockSpec((IN_FEATURES, HIDDEN), const, pipeline_mode=resident),  # w1
            pl.BlockSpec((1, HIDDEN), const, pipeline_mode=resident),     # b1
            pl.BlockSpec((HIDDEN, HIDDEN), const, pipeline_mode=resident),  # w2
            pl.BlockSpec((1, HIDDEN), const, pipeline_mode=resident),     # b2
            pl.BlockSpec((HIDDEN, OUT_PAD), const, pipeline_mode=resident),  # w3 (padded)
            pl.BlockSpec((1, OUT_PAD), const, pipeline_mode=resident),    # b3 (padded)
        ],
        out_specs=pl.BlockSpec((tb, OUT_PAD), lambda i: (i, 0)),
        compiler_params=pltpu.CompilerParams(
            dimension_semantics=("parallel",),
            vmem_limit_bytes=32 * 1024 * 1024,
        ),
    )(x_p, w1p, b1, w2p, b2, w3p, b3p)

    # Padded batch rows produce garbage (ReLU(b1) propagates); slice them off.
    return out[:B, :OUT_FEATURES].astype(jnp.float32)


def init_params(key):
    """Deterministic parameter init (shapes match the nn.Linear layers)."""
    k1, k2, k3, k4, k5, k6 = jax.random.split(key, 6)

    def uniform(k, shape, fan_in):
        bound = 1.0 / jnp.sqrt(fan_in)
        return jax.random.uniform(k, shape, jnp.float32, -bound, bound)

    # Stored as (in, out); PyTorch stores (out, in) and applies x @ W.T.
    w1 = uniform(k1, (IN_FEATURES, HIDDEN), IN_FEATURES)
    b1 = uniform(k2, (1, HIDDEN), IN_FEATURES)
    w2 = uniform(k3, (HIDDEN, HIDDEN), HIDDEN)
    b2 = uniform(k4, (1, HIDDEN), HIDDEN)
    w3 = uniform(k5, (HIDDEN, OUT_FEATURES), HIDDEN)
    b3 = uniform(k6, (1, OUT_FEATURES), HIDDEN)
    return (w1, b1, w2, b2, w3, b3)


def reference_forward(x_nchw, params):
    """Pure-JAX reference with the same bf16-operand / f32-accum recipe."""
    w1, b1, w2, b2, w3, b3 = params
    x = x_nchw.reshape(x_nchw.shape[0], -1).astype(jnp.bfloat16)
    h1 = jnp.dot(x, w1.astype(jnp.bfloat16),
                 preferred_element_type=jnp.float32) + b1
    h1 = jnp.maximum(h1, 0.0).astype(jnp.bfloat16)
    h2 = jnp.dot(h1, w2.astype(jnp.bfloat16),
                 preferred_element_type=jnp.float32) + b2
    h2 = jnp.maximum(h2, 0.0).astype(jnp.bfloat16)
    h3 = jnp.dot(h2, w3.astype(jnp.bfloat16),
                 preferred_element_type=jnp.float32) + b3
    return h3.astype(jnp.bfloat16).astype(jnp.float32)   # match kernel writeback


if __name__ == "__main__":
    key = jax.random.PRNGKey(0)
    k_x1, k_x2, k_p = jax.random.split(key, 3)
    params = init_params(k_p)

    # Small single-tile case (B=40 -> one 48-row tile).
    B1 = 40
    x1 = jax.random.normal(k_x1, (B1, 1, 28, 28), dtype=jnp.float32)
    out1 = jax.block_until_ready(neural_network_forward(x1, params))
    ref1 = reference_forward(x1, params)
    assert out1.shape == (B1, OUT_FEATURES)
    assert jnp.allclose(out1, ref1, atol=2e-2, rtol=2e-2), (
        float(jnp.max(jnp.abs(out1 - ref1))))

    # Multi-step grid case (B=300 -> tb=256, 2 grid steps, batch padding).
    B2 = 300
    x2 = jax.random.normal(k_x2, (B2, 1, 28, 28), dtype=jnp.float32)
    out2 = jax.block_until_ready(neural_network_forward(x2, params))
    ref2 = reference_forward(x2, params)
    assert out2.shape == (B2, OUT_FEATURES)
    assert jnp.allclose(out2, ref2, atol=2e-2, rtol=2e-2), (
        float(jnp.max(jnp.abs(out2 - ref2))))

    print("KERNEL_OK")
</pallas_src>

<mosaic_0001>
module attributes {stable_mosaic.version = 11 : i64} {
  func.func @mlp_kernel(%arg0: i32, %arg1: memref<48x784xbf16, #tpu.memory_space<vmem>>, %arg2: memref<784x512xbf16, #tpu.memory_space<vmem>>, %arg3: memref<1x512xf32, #tpu.memory_space<vmem>>, %arg4: memref<512x512xbf16, #tpu.memory_space<vmem>>, %arg5: memref<1x512xf32, #tpu.memory_space<vmem>>, %arg6: memref<512x128xbf16, #tpu.memory_space<vmem>>, %arg7: memref<1x128xf32, #tpu.memory_space<vmem>>, %arg8: memref<48x128xbf16, #tpu.memory_space<vmem>>) attributes {dimension_semantics = [#tpu.dimension_semantics<parallel>], iteration_bounds = array<i64: 1>, scalar_prefetch = 0 : i64, scratch_operands = 0 : i64, tpu.core_type = #tpu.core_type<tc>, window_params = [{transform_indices = @transform_0, window_bounds = array<i64: 48, 784>}, {pipeline_mode = #tpu.pipeline_mode<synchronous>, transform_indices = @transform_1, window_bounds = array<i64: 784, 512>}, {pipeline_mode = #tpu.pipeline_mode<synchronous>, transform_indices = @transform_2, window_bounds = array<i64: 1, 512>}, {pipeline_mode = #tpu.pipeline_mode<synchronous>, transform_indices = @transform_3, window_bounds = array<i64: 512, 512>}, {pipeline_mode = #tpu.pipeline_mode<synchronous>, transform_indices = @transform_4, window_bounds = array<i64: 1, 512>}, {pipeline_mode = #tpu.pipeline_mode<synchronous>, transform_indices = @transform_5, window_bounds = array<i64: 512, 128>}, {pipeline_mode = #tpu.pipeline_mode<synchronous>, transform_indices = @transform_6, window_bounds = array<i64: 1, 128>}, {transform_indices = @transform_7, window_bounds = array<i64: 48, 128>}]} {
    %c0 = arith.constant 0 : index
    %c0_0 = arith.constant 0 : index
    %0 = vector.load %arg1[%c0, %c0_0] : memref<48x784xbf16, #tpu.memory_space<vmem>>, vector<48x784xbf16>
    %c0_1 = arith.constant 0 : index
    %c0_2 = arith.constant 0 : index
    %1 = vector.load %arg2[%c0_1, %c0_2] : memref<784x512xbf16, #tpu.memory_space<vmem>>, vector<784x512xbf16>
    %cst = arith.constant dense<0.000000e+00> : vector<48x512xf32>
    %2 = tpu.matmul %0, %1, %cst {dimension_numbers = #tpu.dot_dimension_numbers<[1], [0], [0], [1], [0, 0, 1, 1], [], []>} : vector<48x784xbf16>, vector<784x512xbf16>, vector<48x512xf32> -> vector<48x512xf32>
    %c0_3 = arith.constant 0 : index
    %c0_4 = arith.constant 0 : index
    %3 = vector.load %arg3[%c0_3, %c0_4] : memref<1x512xf32, #tpu.memory_space<vmem>>, vector<1x512xf32>
    %4 = vector.broadcast %3 : vector<1x512xf32> to vector<48x512xf32>
    %5 = arith.addf %2, %4 : vector<48x512xf32>
    %cst_5 = arith.constant 0.000000e+00 : f32
    %6 = vector.broadcast %cst_5 : f32 to vector<48x512xf32>
    %7 = arith.maximumf %5, %6 : vector<48x512xf32>
    %8 = arith.truncf %7 : vector<48x512xf32> to vector<48x512xbf16>
    %c0_6 = arith.constant 0 : index
    %c0_7 = arith.constant 0 : index
    %9 = vector.load %arg4[%c0_6, %c0_7] : memref<512x512xbf16, #tpu.memory_space<vmem>>, vector<512x512xbf16>
    %cst_8 = arith.constant dense<0.000000e+00> : vector<48x512xf32>
    %10 = tpu.matmul %8, %9, %cst_8 {dimension_numbers = #tpu.dot_dimension_numbers<[1], [0], [0], [1], [0, 0, 1, 1], [], []>} : vector<48x512xbf16>, vector<512x512xbf16>, vector<48x512xf32> -> vector<48x512xf32>
    %c0_9 = arith.constant 0 : index
    %c0_10 = arith.constant 0 : index
    %11 = vector.load %arg5[%c0_9, %c0_10] : memref<1x512xf32, #tpu.memory_space<vmem>>, vector<1x512xf32>
    %12 = vector.broadcast %11 : vector<1x512xf32> to vector<48x512xf32>
    %13 = arith.addf %10, %12 : vector<48x512xf32>
    %cst_11 = arith.constant 0.000000e+00 : f32
    %14 = vector.broadcast %cst_11 : f32 to vector<48x512xf32>
    %15 = arith.maximumf %13, %14 : vector<48x512xf32>
    %16 = arith.truncf %15 : vector<48x512xf32> to vector<48x512xbf16>
    %c0_12 = arith.constant 0 : index
    %c0_13 = arith.constant 0 : index
    %17 = vector.load %arg6[%c0_12, %c0_13] : memref<512x128xbf16, #tpu.memory_space<vmem>>, vector<512x128xbf16>
    %cst_14 = arith.constant dense<0.000000e+00> : vector<48x128xf32>
    %18 = tpu.matmul %16, %17, %cst_14 {dimension_numbers = #tpu.dot_dimension_numbers<[1], [0], [0], [1], [0, 0, 1, 1], [], []>} : vector<48x512xbf16>, vector<512x128xbf16>, vector<48x128xf32> -> vector<48x128xf32>
    %c0_15 = arith.constant 0 : index
    %c0_16 = arith.constant 0 : index
    %19 = vector.load %arg7[%c0_15, %c0_16] : memref<1x128xf32, #tpu.memory_space<vmem>>, vector<1x128xf32>
    %20 = vector.broadcast %19 : vector<1x128xf32> to vector<48x128xf32>
    %21 = arith.addf %18, %20 : vector<48x128xf32>
    %22 = arith.truncf %21 : vector<48x128xf32> to vector<48x128xbf16>
    %c0_17 = arith.constant 0 : index
    %c0_18 = arith.constant 0 : index
    %23 = vector.load %arg8[%c0_17, %c0_18] : memref<48x128xbf16, #tpu.memory_space<vmem>>, vector<48x128xbf16>
    tpu.vector_store %arg8[%c0_17, %c0_18], %22 {strides = array<i32>} : memref<48x128xbf16, #tpu.memory_space<vmem>>, vector<48x128xbf16>,
    return
  }
  func.func @transform_0(%arg0: i32) -> (i32, i32) {
    %c0_i32 = arith.constant 0 : i32
    %c0_i32_0 = arith.constant 0 : i32
    return %arg0, %c0_i32 : i32, i32
  }
  func.func @transform_1(%arg0: i32) -> (i32, i32) {
    %c0_i32 = arith.constant 0 : i32
    %c0_i32_0 = arith.constant 0 : i32
    %c0_i32_1 = arith.constant 0 : i32
    return %c0_i32, %c0_i32_0 : i32, i32
  }
  func.func @transform_2(%arg0: i32) -> (i32, i32) {
    %c0_i32 = arith.constant 0 : i32
    %c0_i32_0 = arith.constant 0 : i32
    %c0_i32_1 = arith.constant 0 : i32
    return %c0_i32, %c0_i32_0 : i32, i32
  }
  func.func @transform_3(%arg0: i32) -> (i32, i32) {
    %c0_i32 = arith.constant 0 : i32
    %c0_i32_0 = arith.constant 0 : i32
    %c0_i32_1 = arith.constant 0 : i32
    return %c0_i32, %c0_i32_0 : i32, i32
  }
  func.func @transform_4(%arg0: i32) -> (i32, i32) {
    %c0_i32 = arith.constant 0 : i32
    %c0_i32_0 = arith.constant 0 : i32
    %c0_i32_1 = arith.constant 0 : i32
    return %c0_i32, %c0_i32_0 : i32, i32
  }
  func.func @transform_5(%arg0: i32) -> (i32, i32) {
    %c0_i32 = arith.constant 0 : i32
    %c0_i32_0 = arith.constant 0 : i32
    %c0_i32_1 = arith.constant 0 : i32
    return %c0_i32, %c0_i32_0 : i32, i32
  }
  func.func @transform_6(%arg0: i32) -> (i32, i32) {
    %c0_i32 = arith.constant 0 : i32
    %c0_i32_0 = arith.constant 0 : i32
    %c0_i32_1 = arith.constant 0 : i32
    return %c0_i32, %c0_i32_0 : i32, i32
  }
  func.func @transform_7(%arg0: i32) -> (i32, i32) {
    %c0_i32 = arith.constant 0 : i32
    %c0_i32_0 = arith.constant 0 : i32
    return %arg0, %c0_i32 : i32, i32
  }
}

</mosaic_0001>

<bundles_post_ra>
// kernel: tpu_custom_call.1
= control target key start
LH: loop header
LB: loop body
LE: loop exit
PB: predicated region body
PF: predicated region fallthrough
CT: control target
= control target key end

     0   :  { %12 = vsyncpa [#allocation3], 0  ;;  %s4966_s0 = inlined_call_operand.hbm [shape: bf16[48,784], index: 0, kind: input, shape index: {}]   ;;  %s4967_s1 = inlined_call_operand.hbm [shape: bf16[784,512], index: 1, kind: input, shape index: {}]   ;;  %s4968_s2 = inlined_call_operand.hbm [shape: f32[1,512], index: 2, kind: input, shape index: {}]   ;;  %s4969_s3 = inlined_call_operand.hbm [shape: bf16[512,512], index: 3, kind: input, shape index: {}]   ;;  %s4970_s4 = inlined_call_operand.vmem [shape: f32[1,512], index: 4, kind: input, shape index: {}]   ;;  %s4971_s5 = inlined_call_operand.hbm [shape: bf16[512,128], index: 5, kind: input, shape index: {}]   ;;  %s4972_s6 = inlined_call_operand.vmem [shape: f32[1,128], index: 6, kind: input, shape index: {}]   ;;  %s4973_s7 = inlined_call_operand.hbm [shape: bf16[48,128], index: 7, kind: output, shape index: {}]  }
   0x1   :  { %13 = vsyncpa [#allocation6], 0 }
   0x2   :  { %14 = vsyncpa [#allocation9], 0 }
   0x3   :  { %15 = vsyncpa [#allocation4], 0  ;;  %s4653_s24 = smov [#allocation5]  }
   0x4   :  { %s33_s25 = sshll.u32 %s4653_s24, 4  ;;  %s34_s25 = int_to_ptr.vmem [resolvable:$true] %s33_s25 }
   0x5   :  { %s4533_s26 = scalar_lea.vmem %s34_s25, 25088  ;;  %p4538_p1 = scmp.lt.s32.totalorder %s34_s25, %s34_s25 }
   0x6   :  { %p4534_p0 = scmp.ne.s32.totalorder %s34_s25, %s4533_s26  ;;  %p4539_p2 = scmp.lt.s32.totalorder %s4533_s26, %s4533_s26 }
   0x8   :  { %p4540_p3 = por %p4539_p2, %p4538_p1 }
   0xa   :  { %p4541_p4 = pnand %p4540_p3, %p4534_p0 }
   0xc   :  { %4544 = shalt.err (!%p4541_p4)
}
   0xd   :  { %s4654_s27 = smov 256   ;;  %s4655_s28 = smov 16  }
   0xe   :  { %39 = dma.hbm_to_vmem [thread:$0]  %s4967_s1, 25088, %s34_s25, [#allocation6], %s4654_s27, %s4654_s27, %s4655_s28  }
   0xf   :  { %s4656_s8 = smov [#allocation8]   ;;  %s4657_s10 = smov [#allocation2]  }
  0x10   :  { %s55_s9 = sshll.u32 %s4656_s8, 4  ;;  %s21_s11 = sshll.u32 %s4657_s10, 4  ;;  %s56_s9 = int_to_ptr.vmem [resolvable:$true] %s55_s9  ;;  %s22_s11 = int_to_ptr.vmem [resolvable:$true] %s21_s11 }
  0x11   :  { %s4553_s12 = scalar_lea.vmem %s56_s9, 16384  ;;  %p4558_p6 = scmp.lt.s32.totalorder %s56_s9, %s56_s9 }
  0x12   :  { %p4554_p5 = scmp.ne.s32.totalorder %s56_s9, %s4553_s12  ;;  %p4559_p7 = scmp.lt.s32.totalorder %s4553_s12, %s4553_s12 }
  0x14   :  { %p4560_p8 = por %p4559_p7, %p4558_p6 }
  0x16   :  { %p4561_p9 = pnand %p4560_p8, %p4554_p5 }
  0x18   :  { %4564 = shalt.err (!%p4561_p9)
}
  0x19   :  { %61 = dma.hbm_to_vmem [thread:$0]  %s4969_s3, 16384, %s56_s9, [#allocation9], %s4654_s27, %s4654_s27, %s4655_s28  }
  0x1a   :  { %s4573_s15 = scalar_lea.vmem %s22_s11, 2688  ;;  %p4578_p11 = scmp.lt.s32.totalorder %s22_s11, %s22_s11 }
  0x1b   :  { %p4574_p10 = scmp.ne.s32.totalorder %s22_s11, %s4573_s15  ;;  %p4579_p12 = scmp.lt.s32.totalorder %s4573_s15, %s4573_s15 }
  0x1d   :  { %p4580_p13 = por %p4579_p12, %p4578_p11 }
  0x1f   :  { %p4581_p0 = pnand %p4580_p13, %p4574_p10 }
  0x21   :  { %4584 = shalt.err (!%p4581_p0)
}
  0x22   :  { %s4658_s1 = smov 448   ;;  %s4659_s16 = smov 28  }
  0x23   :  { %27 = dma.hbm_to_vmem [thread:$0]  %s4966_s0, 2688, %s22_s11, [#allocation3], %s4658_s1, %s4658_s1, %s4659_s16  }
  0x24   :  { %s4660_s19 = smov [#allocation7]   ;;  %s4661_s21 = smov [#allocation10]  }
  0x25   :  { %s46_s20 = sshll.u32 %s4660_s19, 4  ;;  %s69_s22 = sshll.u32 %s4661_s21, 4  ;;  %s47_s20 = int_to_ptr.vmem [resolvable:$true] %s46_s20  ;;  %s70_s22 = int_to_ptr.vmem [resolvable:$true] %s69_s22 }
  0x26   :  { %s4593_s3 = scalar_lea.vmem %s47_s20, 64  ;;  %p4598_p2 = scmp.lt.s32.totalorder %s47_s20, %s47_s20 }
  0x27   :  { %p4594_p1 = scmp.ne.s32.totalorder %s47_s20, %s4593_s3  ;;  %p4599_p3 = scmp.lt.s32.totalorder %s4593_s3, %s4593_s3 }
  0x29   :  { %p4600_p4 = por %p4599_p3, %p4598_p2 }
  0x2b   :  { %p4601_p5 = pnand %p4600_p4, %p4594_p1 }
  0x2d   :  { %4604 = shalt.err (!%p4601_p5)
}
  0x2e   :  { %49 = dma.hbm_to_vmem [thread:$0]  %s4968_s2, 64, %s47_s20, [#allocation6]  }
  0x2f   :  { %s4613_s25 = scalar_lea.vmem %s70_s22, 4096  ;;  %p4618_p7 = scmp.lt.s32.totalorder %s70_s22, %s70_s22 }
  0x30   :  { %p4614_p6 = scmp.ne.s32.totalorder %s70_s22, %s4613_s25  ;;  %p4619_p8 = scmp.lt.s32.totalorder %s4613_s25, %s4613_s25 }
  0x32   :  { %p4620_p9 = por %p4619_p8, %p4618_p7 }
  0x34   :  { %p4621_p10 = pnand %p4620_p9, %p4614_p6 }
  0x36   :  { %4624 = shalt.err (!%p4621_p10)
}
  0x37   :  { %s4662_s0 = smov 64   ;;  %s4663_s26 = smov 4  }
  0x38   :  { %75 = dma.hbm_to_vmem [thread:$0]  %s4971_s5, 4096, %s70_s22, [#allocation9], %s4662_s0, %s4662_s0, %s4663_s26  }
  0x39   :  { %4645 = dma.done.wait [#allocation3], 2688  }
  0x3a   :  { %4646 = vsyncadd [#allocation3], 4294964608 }
  0x3b   :  { %4647 = dma.done.wait [#allocation6], 25152  }
  0x3c   :  { %4648 = vsyncadd [#allocation6], 4294942144 }
  0x3d   :  { %4649 = dma.done.wait [#allocation9], 20480  }
  0x3e   :  { %4650 = vsyncadd [#allocation9], 4294946816  ;;  %v3969_v0 = vld [vmem:[#allocation5 + $0xe4] ss:$16 sps:$4 sm:$0xff]   ;;  %v3973_v2 = vld [vmem:[#allocation5 + $0xe0] ss:$16 sps:$4 sm:$0xff]  }
  0x3f   :  { %v3971_v1 = vld [vmem:[#allocation5 + $0x2e4] ss:$16 sps:$4 sm:$0xff]   ;;  %1431 = vmatprep.subr.bf16.mxu0 %v3969_v0  ;;  %v3974_v3 = vld [vmem:[#allocation5 + $0x2e0] ss:$16 sps:$4 sm:$0xff]   ;;  %v4724_v49 = vld [vmem:[#allocation2 + $0x4] ss:$28 sps:$4 sm:$0xff]  }
  0x40   :  { %1494 = vmatprep.subr.bf16.mxu1 %v3971_v1  ;;  %v3975_v4 = vld [vmem:[#allocation5 + $0xc4] ss:$16 sps:$4 sm:$0xff]   ;;  %1432 = vmatpush1.bf16.msra.mxu0 %v3973_v2  ;;  %v3979_v6 = vld [vmem:[#allocation5 + $0xc0] ss:$16 sps:$4 sm:$0xff]   ;;  %vm1421_vm0 = vcmask 130048  }
  0x41   :  { %1495 = vmatpush1.bf16.msra.mxu1 %v3974_v3  ;;  %v3977_v5 = vld [vmem:[#allocation5 + $0x2c4] ss:$16 sps:$4 sm:$0xff]   ;;  %1433 = vmatprep.subr.bf16.mxu0 %v3975_v4  ;;  %v3980_v7 = vld [vmem:[#allocation5 + $0x2c0] ss:$16 sps:$4 sm:$0xff]  }
  0x42   :  { %1496 = vmatprep.subr.bf16.mxu1 %v3977_v5  ;;  %v3981_v8 = vld [vmem:[#allocation5 + $0xa4] ss:$16 sps:$4 sm:$0xff]   ;;  %v3985_v10 = vld [vmem:[#allocation5 + $0xa0] ss:$16 sps:$4 sm:$0xff]   ;;  %1463 = vmatprep.mubr.bf16.mxu0 %v4724_v49 }
  0x43   :  { %v3983_v9 = vld [vmem:[#allocation5 + $0x2a4] ss:$16 sps:$4 sm:$0xff]   ;;  %v3986_v11 = vld [vmem:[#allocation5 + $0x2a0] ss:$16 sps:$4 sm:$0xff]  }
  0x44   :  { %1434 = vmatpush1.bf16.msra.mxu0 %v3979_v6  ;;  %v3987_v12 = vld [vmem:[#allocation5 + $0x84] ss:$16 sps:$4 sm:$0xff]   ;;  %v3991_v14 = vld [vmem:[#allocation5 + $0x80] ss:$16 sps:$4 sm:$0xff]  }
  0x45   :  { %1497 = vmatpush1.bf16.msra.mxu1 %v3980_v7  ;;  %1435 = vmatprep.subr.bf16.mxu0 %v3981_v8  ;;  %v3989_v13 = vld [vmem:[#allocation5 + $0x284] ss:$16 sps:$4 sm:$0xff]   ;;  %v3992_v15 = vld [vmem:[#allocation5 + $0x280] ss:$16 sps:$4 sm:$0xff]  }
  0x46   :  { %1498 = vmatprep.subr.bf16.mxu1 %v3983_v9  ;;  %v3993_v16 = vld [vmem:[#allocation5 + $0x64] ss:$16 sps:$4 sm:$0xff]   ;;  %v3997_v18 = vld [vmem:[#allocation5 + $0x60] ss:$16 sps:$4 sm:$0xff]  }
  0x47   :  { %v3995_v17 = vld [vmem:[#allocation5 + $0x264] ss:$16 sps:$4 sm:$0xff]   ;;  %v3998_v19 = vld [vmem:[#allocation5 + $0x260] ss:$16 sps:$4 sm:$0xff]  }
  0x48   :  { %1436 = vmatpush1.bf16.msra.mxu0 %v3985_v10  ;;  %v3999_v20 = vld [vmem:[#allocation5 + $0x44] ss:$16 sps:$4 sm:$0xff]   ;;  %v4003_v22 = vld [vmem:[#allocation5 + $0x40] ss:$16 sps:$4 sm:$0xff]   ;;  %v4082_v10 = vld [vmem:[#allocation2 + $0x44] ss:$28 sps:$4 sm:$0xff]  }
  0x49   :  { %1499 = vmatpush1.bf16.msra.mxu1 %v3986_v11  ;;  %1437 = vmatprep.subr.bf16.mxu0 %v3987_v12  ;;  %v4001_v21 = vld [vmem:[#allocation5 + $0x244] ss:$16 sps:$4 sm:$0xff]   ;;  %v4004_v23 = vld [vmem:[#allocation5 + $0x240] ss:$16 sps:$4 sm:$0xff]   ;;  %v4106_v11 = vld [vmem:[#allocation5 + $0xec] ss:$16 sps:$4 sm:$0xff]  }
  0x4a   :  { %1500 = vmatprep.subr.bf16.mxu1 %v3989_v13  ;;  %v4005_v24 = vld [vmem:[#allocation5 + $0x24] ss:$16 sps:$4 sm:$0xff]   ;;  %v4009_v26 = vld [vmem:[#allocation5 + $0x20] ss:$16 sps:$4 sm:$0xff]  }
  0x4b   :  { %v4007_v25 = vld [vmem:[#allocation5 + $0x224] ss:$16 sps:$4 sm:$0xff]   ;;  %v4010_v27 = vld [vmem:[#allocation5 + $0x220] ss:$16 sps:$4 sm:$0xff]  }
  0x4c   :  { %1438 = vmatpush1.bf16.msra.mxu0 %v3991_v14  ;;  %v4011_v28 = vld [vmem:[#allocation5 + $0x4] ss:$16 sps:$4 sm:$0xff]   ;;  %v4015_v30 = vld [vmem:[#allocation5] ss:$16 sps:$4 sm:$0xff]  }
  0x4d   :  { %1501 = vmatpush1.bf16.msra.mxu1 %v3992_v15  ;;  %1439 = vmatprep.subr.bf16.mxu0 %v3993_v16  ;;  %v4013_v29 = vld [vmem:[#allocation5 + $0x204] ss:$16 sps:$4 sm:$0xff]   ;;  %v4016_v31 = vld [vmem:[#allocation5 + $0x200] ss:$16 sps:$4 sm:$0xff]  }
  0x4e   :  { %1502 = vmatprep.subr.bf16.mxu1 %v3995_v17  ;;  %v4017_v32 = vld [vmem:[#allocation5 + $0x1e4] ss:$16 sps:$4 sm:$0xff]   ;;  %v4021_v34 = vld [vmem:[#allocation5 + $0x1e0] ss:$16 sps:$4 sm:$0xff]  }
  0x4f   :  { %v4019_v33 = vld [vmem:[#allocation5 + $0x3e4] ss:$16 sps:$4 sm:$0xff]   ;;  %v4022_v35 = vld [vmem:[#allocation5 + $0x3e0] ss:$16 sps:$4 sm:$0xff]  }
  0x50   :  { %1440 = vmatpush1.bf16.msra.mxu0 %v3997_v18  ;;  %v4023_v36 = vld [vmem:[#allocation5 + $0x1c4] ss:$16 sps:$4 sm:$0xff]   ;;  %v4027_v38 = vld [vmem:[#allocation5 + $0x1c0] ss:$16 sps:$4 sm:$0xff]   ;;  %v4738_v18 = vld [vmem:[#allocation2 + $0x74] ss:$28 sps:$4 sm:$0xff]  }
  0x51   :  { %1503 = vmatpush1.bf16.msra.mxu1 %v3998_v19  ;;  %1441 = vmatprep.subr.bf16.mxu0 %v3999_v20  ;;  %v4025_v37 = vld [vmem:[#allocation5 + $0x3c4] ss:$16 sps:$4 sm:$0xff]   ;;  %v4028_v39 = vld [vmem:[#allocation5 + $0x3c0] ss:$16 sps:$4 sm:$0xff]  }
  0x52   :  { %1504 = vmatprep.subr.bf16.mxu1 %v4001_v21  ;;  %v4029_v40 = vld [vmem:[#allocation5 + $0x1a4] ss:$16 sps:$4 sm:$0xff]   ;;  %v4033_v42 = vld [vmem:[#allocation5 + $0x1a0] ss:$16 sps:$4 sm:$0xff]  }
  0x53   :  { %v4031_v41 = vld [vmem:[#allocation5 + $0x3a4] ss:$16 sps:$4 sm:$0xff]   ;;  %v4034_v43 = vld [vmem:[#allocation5 + $0x3a0] ss:$16 sps:$4 sm:$0xff]  }
  0x54   :  { %1442 = vmatpush1.bf16.msra.mxu0 %v4003_v22  ;;  %v4035_v44 = vld [vmem:[#allocation5 + $0x184] ss:$16 sps:$4 sm:$0xff]   ;;  %v4039_v46 = vld [vmem:[#allocation5 + $0x180] ss:$16 sps:$4 sm:$0xff]  }
  0x55   :  { %1505 = vmatpush1.bf16.msra.mxu1 %v4004_v23  ;;  %1443 = vmatprep.subr.bf16.mxu0 %v4005_v24  ;;  %v4037_v45 = vld [vmem:[#allocation5 + $0x384] ss:$16 sps:$4 sm:$0xff]   ;;  %v4040_v47 = vld [vmem:[#allocation5 + $0x380] ss:$16 sps:$4 sm:$0xff]  }
  0x56   :  { %1506 = vmatprep.subr.bf16.mxu1 %v4007_v25  ;;  %v4041_v48 = vld [vmem:[#allocation5 + $0x164] ss:$16 sps:$4 sm:$0xff]   ;;  %v4045_v52 = vld [vmem:[#allocation5 + $0x160] ss:$16 sps:$4 sm:$0xff]  }
  0x57   :  { %v4043_v50 = vld [vmem:[#allocation5 + $0x364] ss:$16 sps:$4 sm:$0xff]   ;;  %v4046_v53 = vld [vmem:[#allocation5 + $0x360] ss:$16 sps:$4 sm:$0xff]  }
  0x58   :  { %1444 = vmatpush1.bf16.msra.mxu0 %v4009_v26  ;;  %v4726_v51 = vld [vmem:[#allocation2 + $0xc] ss:$28 sps:$4 sm:$0xff]   ;;  %v4730_v3 = vld [vmem:[#allocation2] ss:$28 sps:$4 sm:$0xff]   ;;  %v4736_v14 = vld [vmem:[#allocation2 + $0x38] ss:$28 sps:$4 sm:$0xff]  }
  0x59   :  { %1507 = vmatpush1.bf16.msra.mxu1 %v4010_v27  ;;  %1445 = vmatprep.subr.bf16.mxu0 %v4011_v28  ;;  %v4047_v54 = vld [vmem:[#allocation5 + $0x144] ss:$16 sps:$4 sm:$0xff]   ;;  %v4051_v56 = vld [vmem:[#allocation5 + $0x140] ss:$16 sps:$4 sm:$0xff]   ;;  %v4664_v27 = vmov 0  }
  0x5a   :  { %1508 = vmatprep.subr.bf16.mxu1 %v4013_v29  ;;  %1526 = vmatprep.mubr.bf16.mxu1 %v4726_v51  ;;  %v4049_v55 = vld [vmem:[#allocation5 + $0x344] ss:$16 sps:$4 sm:$0xff]   ;;  %v4052_v57 = vld [vmem:[#allocation5 + $0x340] ss:$16 sps:$4 sm:$0xff]   ;;  %v4104_v29 = vld [vmem:[#allocation5 + $0xe8] ss:$16 sps:$4 sm:$0xff]  }
  0x5b   :  { %v4053_v58 = vld [vmem:[#allocation5 + $0x124] ss:$16 sps:$4 sm:$0xff]   ;;  %v4057_v60 = vld [vmem:[#allocation5 + $0x120] ss:$16 sps:$4 sm:$0xff]  }
  0x5c   :  { %1446 = vmatpush1.bf16.msra.mxu0 %v4015_v30  ;;  %v4055_v59 = vld [vmem:[#allocation5 + $0x324] ss:$16 sps:$4 sm:$0xff]   ;;  %v4058_v61 = vld [vmem:[#allocation5 + $0x320] ss:$16 sps:$4 sm:$0xff]  }
  0x5d   :  { %1509 = vmatpush1.bf16.msra.mxu1 %v4016_v31  ;;  %1447 = vmatprep.subr.bf16.mxu0 %v4017_v32  ;;  %v4059_v62 = vld [vmem:[#allocation5 + $0x104] ss:$16 sps:$4 sm:$0xff]   ;;  %v4063_v0 = vld [vmem:[#allocation5 + $0x100] ss:$16 sps:$4 sm:$0xff]   ;;  %v4113_v32 = vld [vmem:[#allocation5 + $0xcc] ss:$16 sps:$4 sm:$0xff]  }
  0x5e   :  { %1510 = vmatprep.subr.bf16.mxu1 %v4019_v33  ;;  %v4061_v63 = vld [vmem:[#allocation5 + $0x304] ss:$16 sps:$4 sm:$0xff]   ;;  %v4064_v1 = vld [vmem:[#allocation5 + $0x300] ss:$16 sps:$4 sm:$0xff]   ;;  %v4746_v33 = vld [vmem:[#allocation2 + $0x14] ss:$28 sps:$4 sm:$0xff]  }
  0x5f   :  { %v4073_v2 = vld [vmem:[#allocation5 + $0x4e4] ss:$16 sps:$4 sm:$0xff]   ;;  %v4068_v5 = vld [vmem:[#allocation2 + $0x8] ss:$28 sps:$4 sm:$0xff]   ;;  %v4097_v23 = vld [vmem:[#allocation2 + $0x78] ss:$28 sps:$4 sm:$0xff]  }
  0x60   :  { %1448 = vmatpush2.bf16.msra.mxu0 %v4021_v34  ;;  %v4076_v4 = vld [vmem:[#allocation5 + $0x604] ss:$16 sps:$4 sm:$0xff]   ;;  %v4071_v6 = vld [vmem:[#allocation5 + $0x4e0] ss:$16 sps:$4 sm:$0xff]  }
  0x61   :  { %1511 = vmatpush2.bf16.msra.mxu1 %v4022_v35  ;;  %1449 = vmatprep.subr.bf16.mxu0 %v4023_v36  ;;  %v4074_v7 = vld [vmem:[#allocation5 + $0x600] ss:$16 sps:$4 sm:$0xff]   ;;  %v4079_v8 = vld [vmem:[#allocation5 + $0x4c4] ss:$16 sps:$4 sm:$0xff]   ;;  %v4111_v35 = vld [vmem:[#allocation5 + $0xc8] ss:$16 sps:$4 sm:$0xff]  }
  0x62   :  { %1512 = vmatprep.subr.bf16.mxu1 %v4025_v37  ;;  %v4732_v9 = vld [vmem:[#allocation2 + $0x3c] ss:$28 sps:$4 sm:$0xff]   ;;  %v4742_v22 = vld [vmem:[#allocation2 + $0x70] ss:$28 sps:$4 sm:$0xff]   ;;  %v4119_v37 = vld [vmem:[#allocation5 + $0xac] ss:$16 sps:$4 sm:$0xff]  }
  0x63   :  { %v4077_v12 = vld [vmem:[#allocation5 + $0x4c0] ss:$16 sps:$4 sm:$0xff]   ;;  %v4088_v13 = vld [vmem:[#allocation5 + $0x4a4] ss:$16 sps:$4 sm:$0xff]  }
  0x64   :  { %1450 = vmatpush2.bf16.msra.mxu0 %v4027_v38  ;;  %v4085_v15 = vld [vmem:[#allocation2 + $0x40] ss:$28 sps:$4 sm:$0xff]   ;;  %v4086_v16 = vld [vmem:[#allocation5 + $0x4a0] ss:$16 sps:$4 sm:$0xff]  }
  0x65   :  { %1513 = vmatpush2.bf16.msra.mxu1 %v4028_v39  ;;  %1451 = vmatprep.subr.bf16.mxu0 %v4029_v40  ;;  %v4091_v17 = vld [vmem:[#allocation5 + $0x484] ss:$16 sps:$4 sm:$0xff]   ;;  %v4089_v20 = vld [vmem:[#allocation5 + $0x480] ss:$16 sps:$4 sm:$0xff]   ;;  %v4117_v39 = vld [vmem:[#allocation5 + $0xa8] ss:$16 sps:$4 sm:$0xff]  }
  0x66   :  { %1514 = vmatprep.subr.bf16.mxu1 %v4031_v41  ;;  %v4094_v19 = vld [vmem:[#allocation2 + $0x7c] ss:$28 sps:$4 sm:$0xff]   ;;  %v4174_v40 = vld [vmem:[#allocation2 + $0x50] ss:$28 sps:$4 sm:$0xff]  }
  0x67   :  { %v4100_v21 = vld [vmem:[#allocation5 + $0x464] ss:$16 sps:$4 sm:$0xff]   ;;  %v4098_v24 = vld [vmem:[#allocation5 + $0x460] ss:$16 sps:$4 sm:$0xff]  }
  0x68   :  { %1452 = vmatpush2.bf16.msra.mxu0 %v4033_v42  ;;  %v4103_v25 = vld [vmem:[#allocation5 + $0x444] ss:$16 sps:$4 sm:$0xff]   ;;  %v4101_v26 = vld [vmem:[#allocation5 + $0x440] ss:$16 sps:$4 sm:$0xff]   ;;  %v4125_v42 = vld [vmem:[#allocation5 + $0x8c] ss:$16 sps:$4 sm:$0xff]  }
  0x69   :  { %1515 = vmatpush2.bf16.msra.mxu1 %v4034_v43  ;;  %1453 = vmatprep.subr.bf16.mxu0 %v4035_v44  ;;  %v4109_v28 = vld [vmem:[#allocation5 + $0x424] ss:$16 sps:$4 sm:$0xff]   ;;  %v4107_v30 = vld [vmem:[#allocation5 + $0x420] ss:$16 sps:$4 sm:$0xff]   ;;  %v4123_v44 = vld [vmem:[#allocation5 + $0x88] ss:$16 sps:$4 sm:$0xff]  }
  0x6a   :  { %1516 = vmatprep.subr.bf16.mxu1 %v4037_v45  ;;  %v4110_v31 = vld [vmem:[#allocation2 + $0x18] ss:$28 sps:$4 sm:$0xff]   ;;  %v4116_v34 = vld [vmem:[#allocation5 + $0x404] ss:$16 sps:$4 sm:$0xff]  }
  0x6b   :  { %v4114_v36 = vld [vmem:[#allocation5 + $0x400] ss:$16 sps:$4 sm:$0xff]   ;;  %v4122_v38 = vld [vmem:[#allocation5 + $0x5e4] ss:$16 sps:$4 sm:$0xff]  }
  0x6c   :  { %1454 = vmatpush2.bf16.msra.mxu0 %v4039_v46  ;;  %v4120_v41 = vld [vmem:[#allocation5 + $0x5e0] ss:$16 sps:$4 sm:$0xff]   ;;  %v4128_v43 = vld [vmem:[#allocation5 + $0x5c4] ss:$16 sps:$4 sm:$0xff]   ;;  %v4131_v46 = vld [vmem:[#allocation5 + $0x6c] ss:$16 sps:$4 sm:$0xff]  }
  0x6d   :  { %1517 = vmatpush2.bf16.msra.mxu1 %v4040_v47  ;;  %1455 = vmatprep.subr.bf16.mxu0 %v4041_v48  ;;  %v4126_v45 = vld [vmem:[#allocation5 + $0x5c0] ss:$16 sps:$4 sm:$0xff]   ;;  %v4134_v47 = vld [vmem:[#allocation5 + $0x5a4] ss:$16 sps:$4 sm:$0xff]   ;;  %v4129_v48 = vld [vmem:[#allocation5 + $0x68] ss:$16 sps:$4 sm:$0xff]  }
  0x6e   :  { %1518 = vmatprep.subr.bf16.mxu1 %v4043_v50  ;;  %v4190_v50 = vld [vmem:[#allocation2 + $0x88] ss:$28 sps:$4 sm:$0xff]  }
  0x70   :  { %1456 = vmatpush2.bf16.msra.mxu0 %v4045_v52  ;;  %v4132_v52 = vld [vmem:[#allocation5 + $0x5a0] ss:$16 sps:$4 sm:$0xff]  }
  0x71   :  { %1519 = vmatpush2.bf16.msra.mxu1 %v4046_v53  ;;  %1457 = vmatprep.subr.bf16.mxu0 %v4047_v54  ;;  %v4137_v53 = vld [vmem:[#allocation5 + $0x4c] ss:$16 sps:$4 sm:$0xff]   ;;  %v4140_v54 = vld [vmem:[#allocation5 + $0x584] ss:$16 sps:$4 sm:$0xff]  }
  0x72   :  { %1520 = vmatprep.subr.bf16.mxu1 %v4049_v55  ;;  %v4135_v55 = vld [vmem:[#allocation5 + $0x48] ss:$16 sps:$4 sm:$0xff]  }
  0x74   :  { %1458 = vmatpush2.bf16.msra.mxu0 %v4051_v56  ;;  %v4138_v56 = vld [vmem:[#allocation5 + $0x580] ss:$16 sps:$4 sm:$0xff]  }
  0x75   :  { %1521 = vmatpush2.bf16.msra.mxu1 %v4052_v57  ;;  %1459 = vmatprep.subr.bf16.mxu0 %v4053_v58  ;;  %v4143_v57 = vld [vmem:[#allocation5 + $0x2c] ss:$16 sps:$4 sm:$0xff]   ;;  %v4146_v58 = vld [vmem:[#allocation5 + $0x564] ss:$16 sps:$4 sm:$0xff]  }
  0x76   :  { %1522 = vmatprep.subr.bf16.mxu1 %v4055_v59  ;;  %v4141_v59 = vld [vmem:[#allocation5 + $0x28] ss:$16 sps:$4 sm:$0xff]  }
  0x78   :  { %1460 = vmatpush2.bf16.msra.mxu0 %v4057_v60  ;;  %v4144_v60 = vld [vmem:[#allocation5 + $0x560] ss:$16 sps:$4 sm:$0xff]  }
  0x79   :  { %1523 = vmatpush2.bf16.msra.mxu1 %v4058_v61  ;;  %1461 = vmatprep.subr.bf16.mxu0 %v4059_v62  ;;  %v4149_v61 = vld [vmem:[#allocation5 + $0xc] ss:$16 sps:$4 sm:$0xff]   ;;  %v4152_v62 = vld [vmem:[#allocation5 + $0x544] ss:$16 sps:$4 sm:$0xff]  }
  0x7a   :  { %1524 = vmatprep.subr.bf16.mxu1 %v4061_v63  ;;  %v4147_v63 = vld [vmem:[#allocation5 + $0x8] ss:$16 sps:$4 sm:$0xff]  }
  0x7c   :  { %1462 = vmatpush2.bf16.msra.mxu0 %v4063_v0  ;;  %v4150_v0 = vld [vmem:[#allocation5 + $0x540] ss:$16 sps:$4 sm:$0xff]  }
  0x7d   :  { %1525 = vmatpush2.bf16.msra.mxu1 %v4064_v1  ;;  %1557 = vmatprep.subr.bf16.mxu0 %v4073_v2  ;;  %v4155_v1 = vld [vmem:[#allocation5 + $0x1ec] ss:$16 sps:$4 sm:$0xff]   ;;  %v4158_v2 = vld [vmem:[#allocation5 + $0x524] ss:$16 sps:$4 sm:$0xff]  }
  0x7e   :  { %1634 = vmatprep.subr.bf16.mxu1 %v4076_v4  ;;  %v4153_v4 = vld [vmem:[#allocation5 + $0x1e8] ss:$16 sps:$4 sm:$0xff]  }
  0x7f   :  { %1464 = vmatmul.mubr.bf16.vlgmr.msra.gmra.mxu0 %v4730_v3 }
  0x80   :  { %1527 = vmatmul.mubr.bf16.vlgmr.msra.gmra.mxu1 %v4068_v5  ;;  %1558 = vmatpush1.bf16.msra.mxu0 %v4071_v6  ;;  %v4161_v5 = vld [vmem:[#allocation5 + $0x1cc] ss:$16 sps:$4 sm:$0xff]   ;;  %v4164_v6 = vld [vmem:[#allocation5 + $0x504] ss:$16 sps:$4 sm:$0xff]  }
  0x81   :  { %1635 = vmatpush1.bf16.msra.mxu1 %v4074_v7  ;;  %1559 = vmatprep.subr.bf16.mxu0 %v4079_v8  ;;  %v4159_v7 = vld [vmem:[#allocation5 + $0x1c8] ss:$16 sps:$4 sm:$0xff]   ;;  %v4162_v8 = vld [vmem:[#allocation5 + $0x500] ss:$16 sps:$4 sm:$0xff]  }
  0x82   :  { %1473 = vmatprep.mubr.bf16.mxu0 %v4732_v9  ;;  %1536 = vmatprep.mubr.bf16.mxu1 %v4082_v10  ;;  %v4170_v10 = vld [vmem:[#allocation5 + $0x1ac] ss:$16 sps:$4 sm:$0xff]  }
  0x83   :  { %1683 = vmatprep.subr.bf16.mxu1 %v4106_v11  ;;  %v4173_v11 = vld [vmem:[#allocation5 + $0x2ec] ss:$16 sps:$4 sm:$0xff]  }
  0x84   :  { %1560 = vmatpush1.bf16.msra.mxu0 %v4077_v12  ;;  %v4755_v12 = vld [vmem:[#allocation2 + $0x10] ss:$28 sps:$4 sm:$0xff]  }
  0x85   :  { %1561 = vmatprep.subr.bf16.mxu0 %v4088_v13  ;;  %v4168_v13 = vld [vmem:[#allocation5 + $0x1a8] ss:$16 sps:$4 sm:$0xff]  }
  0x87   :  { %1474 = vmatmul.mubr.bf16.gmra.mxu0 %v4736_v14 }
  0x88   :  { %1537 = vmatmul.mubr.bf16.gmra.mxu1 %v4085_v15  ;;  %1562 = vmatpush1.bf16.msra.mxu0 %v4086_v16  ;;  %v4171_v15 = vld [vmem:[#allocation5 + $0x2e8] ss:$16 sps:$4 sm:$0xff]   ;;  %v4177_v16 = vld [vmem:[#allocation5 + $0x18c] ss:$16 sps:$4 sm:$0xff]  }
  0x89   :  { %1483 = vmatprep.mubr.bf16.mxu0 %v4738_v18  ;;  %1563 = vmatprep.subr.bf16.mxu0 %v4091_v17  ;;  %v4180_v17 = vld [vmem:[#allocation5 + $0x2cc] ss:$16 sps:$4 sm:$0xff]  }
  0x8a   :  { %1546 = vmatprep.mubr.bf16.mxu1 %v4094_v19  ;;  %v4757_v19 = vld [vmem:[#allocation2 + $0x4c] ss:$28 sps:$4 sm:$0xff]  }
  0x8c   :  { %1564 = vmatpush1.bf16.msra.mxu0 %v4089_v20  ;;  %v4175_v20 = vld [vmem:[#allocation5 + $0x188] ss:$16 sps:$4 sm:$0xff]  }
  0x8d   :  { %1565 = vmatprep.subr.bf16.mxu0 %v4100_v21  ;;  %v4178_v21 = vld [vmem:[#allocation5 + $0x2c8] ss:$16 sps:$4 sm:$0xff]  }
  0x8f   :  { %1484 = vmatmul.mubr.bf16.gmra.mxu0 %v4742_v22 }
  0x90   :  { %1547 = vmatmul.mubr.bf16.gmra.mxu1 %v4097_v23  ;;  %1566 = vmatpush1.bf16.msra.mxu0 %v4098_v24  ;;  %v4185_v23 = vld [vmem:[#allocation5 + $0x16c] ss:$16 sps:$4 sm:$0xff]  }
  0x91   :  { %1652 = vmatprep.mubr.bf16.mxu1 %v4664_v27  ;;  %1567 = vmatprep.subr.bf16.mxu0 %v4103_v25  ;;  %v4189_v24 = vld [vmem:[#allocation5 + $0x2ac] ss:$16 sps:$4 sm:$0xff]   ;;  %v4183_v25 = vld [vmem:[#allocation5 + $0x168] ss:$16 sps:$4 sm:$0xff]  }
  0x92   :  { %1589 = vmatprep.mubr.bf16.mxu0 %v4746_v33 }
  0x94   :  { %1568 = vmatpush1.bf16.msra.mxu0 %v4101_v26  ;;  %v4761_v26 = vld [vmem:[#allocation2 + $0x48] ss:$28 sps:$4 sm:$0xff]  }
  0x95   :  { %1569 = vmatprep.subr.bf16.mxu0 %v4109_v28  ;;  %v4187_v28 = vld [vmem:[#allocation5 + $0x2a8] ss:$16 sps:$4 sm:$0xff]  }
  0x98   :  { %3692 = vmatmul.mubr.msk.bf16.vlgmr.msra.gmra.mxu1 %vm1421_vm0, %v4110_v31  ;;  %1570 = vmatpush1.bf16.msra.mxu0 %v4107_v30  ;;  %v4196_v30 = vld [vmem:[#allocation5 + $0x28c] ss:$16 sps:$4 sm:$0xff]  }
  0x99   :  { %1684 = vmatpush1.bf16.msra.mxu1 %v4104_v29  ;;  %1571 = vmatprep.subr.bf16.mxu0 %v4116_v34  ;;  %v4193_v29 = vld [vmem:[#allocation5 + $0x14c] ss:$16 sps:$4 sm:$0xff]   ;;  %v4194_v34 = vld [vmem:[#allocation5 + $0x288] ss:$16 sps:$4 sm:$0xff]  }
  0x9a   :  { %1685 = vmatprep.subr.bf16.mxu1 %v4113_v32  ;;  %1662 = vmatprep.mubr.bf16.mxu1 %v4664_v27  ;;  %v4763_v31 = vld [vmem:[#allocation2 + $0x84] ss:$28 sps:$4 sm:$0xff]  }
  0x9b   :  { %v4191_v32 = vld [vmem:[#allocation5 + $0x148] ss:$16 sps:$4 sm:$0xff]  }
  0x9c   :  { %1572 = vmatpush1.bf16.msra.mxu0 %v4114_v36  ;;  %v4205_v36 = vld [vmem:[#allocation5 + $0x26c] ss:$16 sps:$4 sm:$0xff]  }
  0x9d   :  { %1686 = vmatpush1.bf16.msra.mxu1 %v4111_v35  ;;  %1573 = vmatprep.subr.bf16.mxu0 %v4122_v38  ;;  %v4201_v35 = vld [vmem:[#allocation5 + $0x12c] ss:$16 sps:$4 sm:$0xff]   ;;  %v4767_v38 = vld [vmem:[#allocation2 + $0x80] ss:$28 sps:$4 sm:$0xff]  }
  0x9e   :  { %1687 = vmatprep.subr.bf16.mxu1 %v4119_v37  ;;  %v4199_v37 = vld [vmem:[#allocation5 + $0x128] ss:$16 sps:$4 sm:$0xff]  }
  0xa0   :  { %3693 = vmatmul.mubr.msk.bf16.gmra.mxu1 %vm1421_vm0, %v4174_v40  ;;  %1574 = vmatpush2.bf16.msra.mxu0 %v4120_v41  ;;  %v4208_v40 = vld [vmem:[#allocation5 + $0x10c] ss:$16 sps:$4 sm:$0xff]  }
  0xa1   :  { %1688 = vmatpush1.bf16.msra.mxu1 %v4117_v39  ;;  %1575 = vmatprep.subr.bf16.mxu0 %v4128_v43  ;;  %v4203_v39 = vld [vmem:[#allocation5 + $0x268] ss:$16 sps:$4 sm:$0xff]   ;;  %v4211_v41 = vld [vmem:[#allocation5 + $0x24c] ss:$16 sps:$4 sm:$0xff]  }
  0xa2   :  { %1689 = vmatprep.subr.bf16.mxu1 %v4125_v42  ;;  %1672 = vmatprep.mubr.bf16.mxu1 %v4664_v27  ;;  %v4206_v42 = vld [vmem:[#allocation5 + $0x108] ss:$16 sps:$4 sm:$0xff]  }
  0xa3   :  { %v4209_v43 = vld [vmem:[#allocation5 + $0x248] ss:$16 sps:$4 sm:$0xff]  }
  0xa4   :  { %1576 = vmatpush2.bf16.msra.mxu0 %v4126_v45  ;;  %v4217_v45 = vld [vmem:[#allocation5 + $0x22c] ss:$16 sps:$4 sm:$0xff]  }
  0xa5   :  { %1690 = vmatpush1.bf16.msra.mxu1 %v4123_v44  ;;  %1577 = vmatprep.subr.bf16.mxu0 %v4134_v47  ;;  %v4214_v44 = vld [vmem:[#allocation5 + $0x4ec] ss:$16 sps:$4 sm:$0xff]   ;;  %v4215_v47 = vld [vmem:[#allocation5 + $0x228] ss:$16 sps:$4 sm:$0xff]  }
  0xa6   :  { %1691 = vmatprep.subr.bf16.mxu1 %v4131_v46  ;;  %v4212_v46 = vld [vmem:[#allocation5 + $0x4e8] ss:$16 sps:$4 sm:$0xff]  }
  0xa8   :  { %3694 = vmatmul.mubr.msk.bf16.gmra.mxu1 %vm1421_vm0, %v4190_v50  ;;  %1578 = vmatpush2.bf16.msra.mxu0 %v4132_v52  ;;  %v4223_v50 = vld [vmem:[#allocation5 + $0x20c] ss:$16 sps:$4 sm:$0xff]   ;;  %v4218_v52 = vld [vmem:[#allocation5 + $0x4c8] ss:$16 sps:$4 sm:$0xff]  }
  0xa9   :  { %1692 = vmatpush1.bf16.msra.mxu1 %v4129_v48  ;;  %1579 = vmatprep.subr.bf16.mxu0 %v4140_v54  ;;  %v4220_v48 = vld [vmem:[#allocation5 + $0x4cc] ss:$16 sps:$4 sm:$0xff]  }
  0xaa   :  { %1693 = vmatprep.subr.bf16.mxu1 %v4137_v53  ;;  %1715 = vmatprep.mubr.bf16.mxu1 %v4724_v49  ;;  %v4156_v49 = vld [vmem:[#allocation5 + $0x520] ss:$16 sps:$4 sm:$0xff]   ;;  %v4221_v53 = vld [vmem:[#allocation5 + $0x208] ss:$16 sps:$4 sm:$0xff]   ;;  %v4226_v54 = vld [vmem:[#allocation5 + $0x4ac] ss:$16 sps:$4 sm:$0xff]  }
  0xac   :  { %1580 = vmatpush2.bf16.msra.mxu0 %v4138_v56  ;;  %v4224_v56 = vld [vmem:[#allocation5 + $0x4a8] ss:$16 sps:$4 sm:$0xff]  }
  0xad   :  { %1694 = vmatpush1.bf16.msra.mxu1 %v4135_v55  ;;  %1581 = vmatprep.subr.bf16.mxu0 %v4146_v58  ;;  %v4229_v55 = vld [vmem:[#allocation5 + $0x3ec] ss:$16 sps:$4 sm:$0xff]  }
  0xae   :  { %1695 = vmatprep.subr.bf16.mxu1 %v4143_v57  ;;  %v4227_v57 = vld [vmem:[#allocation5 + $0x3e8] ss:$16 sps:$4 sm:$0xff]   ;;  %v4235_v58 = vld [vmem:[#allocation5 + $0x3cc] ss:$16 sps:$4 sm:$0xff]  }
  0xb0   :  { %1582 = vmatpush2.bf16.msra.mxu0 %v4144_v60  ;;  %v4238_v60 = vld [vmem:[#allocation5 + $0x46c] ss:$16 sps:$4 sm:$0xff]  }
  0xb1   :  { %1696 = vmatpush1.bf16.msra.mxu1 %v4141_v59  ;;  %1583 = vmatprep.subr.bf16.mxu0 %v4152_v62  ;;  %v4233_v59 = vld [vmem:[#allocation5 + $0x3c8] ss:$16 sps:$4 sm:$0xff]  }
  0xb2   :  { %1697 = vmatprep.subr.bf16.mxu1 %v4149_v61  ;;  %v4241_v61 = vld [vmem:[#allocation5 + $0x3ac] ss:$16 sps:$4 sm:$0xff]   ;;  %v4236_v62 = vld [vmem:[#allocation5 + $0x468] ss:$16 sps:$4 sm:$0xff]  }
  0xb4   :  { %1584 = vmatpush2.bf16.msra.mxu0 %v4150_v0  ;;  %v4247_v0 = vld [vmem:[#allocation5 + $0x38c] ss:$16 sps:$4 sm:$0xff]  }
  0xb5   :  { %1698 = vmatpush1.bf16.msra.mxu1 %v4147_v63  ;;  %1585 = vmatprep.subr.bf16.mxu0 %v4158_v2  ;;  %v4239_v63 = vld [vmem:[#allocation5 + $0x3a8] ss:$16 sps:$4 sm:$0xff]   ;;  %v4250_v2 = vld [vmem:[#allocation5 + $0x42c] ss:$16 sps:$4 sm:$0xff]  }
  0xb6   :  { %1699 = vmatprep.subr.bf16.mxu1 %v4155_v1  ;;  %v4242_v1 = vld [vmem:[#allocation5 + $0x448] ss:$16 sps:$4 sm:$0xff]  }
  0xb8   :  { %1586 = vmatpush2.bf16.msra.mxu0 %v4156_v49  ;;  %v4248_v49 = vld [vmem:[#allocation5 + $0x428] ss:$16 sps:$4 sm:$0xff]  }
  0xb9   :  { %1700 = vmatpush2.bf16.msra.mxu1 %v4153_v4  ;;  %1587 = vmatprep.subr.bf16.mxu0 %v4164_v6  ;;  %v4253_v4 = vld [vmem:[#allocation5 + $0x36c] ss:$16 sps:$4 sm:$0xff]  }
  0xba   :  { %1701 = vmatprep.subr.bf16.mxu1 %v4161_v5  ;;  %v4251_v5 = vld [vmem:[#allocation5 + $0x368] ss:$16 sps:$4 sm:$0xff]   ;;  %v4259_v6 = vld [vmem:[#allocation5 + $0x34c] ss:$16 sps:$4 sm:$0xff]  }
  0xbc   :  { %1588 = vmatpush2.bf16.msra.mxu0 %v4162_v8  ;;  %v4257_v8 = vld [vmem:[#allocation5 + $0x348] ss:$16 sps:$4 sm:$0xff]  }
  0xbd   :  { %1702 = vmatpush2.bf16.msra.mxu1 %v4159_v7  ;;  %1746 = vmatprep.subr.bf16.mxu0 %v4173_v11  ;;  %v4254_v7 = vld [vmem:[#allocation5 + $0x408] ss:$16 sps:$4 sm:$0xff]   ;;  %v4265_v11 = vld [vmem:[#allocation5 + $0x32c] ss:$16 sps:$4 sm:$0xff]  }
  0xbe   :  { %1703 = vmatprep.subr.bf16.mxu1 %v4170_v10  ;;  %v4262_v10 = vld [vmem:[#allocation5 + $0x5ec] ss:$16 sps:$4 sm:$0xff]  }
  0xbf   :  { %1590 = vmatmul.mubr.bf16.vlgmr.msra.gmra.mxu0 %v4755_v12 }
  0xc0   :  { %1747 = vmatpush1.bf16.msra.mxu0 %v4171_v15  ;;  %1599 = vmatprep.mubr.bf16.mxu0 %v4757_v19  ;;  %v4268_v15 = vld [vmem:[#allocation5 + $0x5cc] ss:$16 sps:$4 sm:$0xff]  }
  0xc1   :  { %1704 = vmatpush2.bf16.msra.mxu1 %v4168_v13  ;;  %1748 = vmatprep.subr.bf16.mxu0 %v4180_v17  ;;  %v4263_v13 = vld [vmem:[#allocation5 + $0x328] ss:$16 sps:$4 sm:$0xff]  }
  0xc2   :  { %1705 = vmatprep.subr.bf16.mxu1 %v4177_v16  ;;  %v4271_v16 = vld [vmem:[#allocation5 + $0x30c] ss:$16 sps:$4 sm:$0xff]   ;;  %v4269_v17 = vld [vmem:[#allocation5 + $0x308] ss:$16 sps:$4 sm:$0xff]  }
  0xc4   :  { %1749 = vmatpush1.bf16.msra.mxu0 %v4178_v21  ;;  %v4277_v21 = vld [vmem:[#allocation5 + $0x60c] ss:$16 sps:$4 sm:$0xff]  }
  0xc5   :  { %1706 = vmatpush2.bf16.msra.mxu1 %v4175_v20  ;;  %1750 = vmatprep.subr.bf16.mxu0 %v4189_v24  ;;  %v4274_v20 = vld [vmem:[#allocation5 + $0x5ac] ss:$16 sps:$4 sm:$0xff]   ;;  %v4275_v24 = vld [vmem:[#allocation5 + $0x608] ss:$16 sps:$4 sm:$0xff]  }
  0xc6   :  { %1707 = vmatprep.subr.bf16.mxu1 %v4185_v23  ;;  %v4272_v23 = vld [vmem:[#allocation5 + $0x5a8] ss:$16 sps:$4 sm:$0xff]  }
  0xc7   :  { %1600 = vmatmul.mubr.bf16.gmra.mxu0 %v4761_v26 }
  0xc8   :  { %1751 = vmatpush1.bf16.msra.mxu0 %v4187_v28  ;;  %1609 = vmatprep.mubr.bf16.mxu0 %v4763_v31  ;;  %v4295_v28 = vld [vmem:[#allocation8 + $0xe4] ss:$16 sps:$4 sm:$0xff]  }
  0xc9   :  { %1708 = vmatpush2.bf16.msra.mxu1 %v4183_v25  ;;  %1752 = vmatprep.subr.bf16.mxu0 %v4196_v30  ;;  %v4280_v25 = vld [vmem:[#allocation5 + $0x58c] ss:$16 sps:$4 sm:$0xff]  }
  0xca   :  { %1709 = vmatprep.subr.bf16.mxu1 %v4193_v29  ;;  %v4278_v29 = vld [vmem:[#allocation5 + $0x588] ss:$16 sps:$4 sm:$0xff]   ;;  %v4517_v30 = vld [vmem:[#allocation2 + $0x8] ss:$28 sps:$4 sm:$0xff]  }
  0xcc   :  { %1753 = vmatpush1.bf16.msra.mxu0 %v4194_v34  ;;  %v4283_v34 = vld [vmem:[#allocation5 + $0x56c] ss:$16 sps:$4 sm:$0xff]  }
  0xcd   :  { %1710 = vmatpush2.bf16.msra.mxu1 %v4191_v32  ;;  %1754 = vmatprep.subr.bf16.mxu0 %v4205_v36  ;;  %v4518_v32 = vld [vmem:[#allocation2 + $0x44] ss:$28 sps:$4 sm:$0xff]  }
  0xce   :  { %1711 = vmatprep.subr.bf16.mxu1 %v4201_v35  ;;  %v4281_v35 = vld [vmem:[#allocation5 + $0x568] ss:$16 sps:$4 sm:$0xff]   ;;  %v4286_v36 = vld [vmem:[#allocation5 + $0x54c] ss:$16 sps:$4 sm:$0xff]  }
  0xcf   :  { %1610 = vmatmul.mubr.bf16.gmra.mxu0 %v4767_v38 }
  0xd0   :  { %1755 = vmatpush1.bf16.msra.mxu0 %v4203_v39  ;;  %1778 = vmatprep.mubr.bf16.mxu0 %v4726_v51  ;;  %v4232_v51 = vld [vmem:[#allocation5 + $0x48c] ss:$16 sps:$4 sm:$0xff]   ;;  %v4519_v39 = vld [vmem:[#allocation2 + $0x40] ss:$28 sps:$4 sm:$0xff]  }
  0xd1   :  { %1712 = vmatpush2.bf16.msra.mxu1 %v4199_v37  ;;  %1756 = vmatprep.subr.bf16.mxu0 %v4211_v41  ;;  %v4284_v37 = vld [vmem:[#allocation5 + $0x548] ss:$16 sps:$4 sm:$0xff]   ;;  %v4289_v41 = vld [vmem:[#allocation5 + $0x52c] ss:$16 sps:$4 sm:$0xff]  }
  0xd2   :  { %1713 = vmatprep.subr.bf16.mxu1 %v4208_v40  ;;  %v4520_v40 = vld [vmem:[#allocation2 + $0x7c] ss:$28 sps:$4 sm:$0xff]  }
  0xd4   :  { %1757 = vmatpush1.bf16.msra.mxu0 %v4209_v43  ;;  %v4292_v43 = vld [vmem:[#allocation5 + $0x50c] ss:$16 sps:$4 sm:$0xff]  }
  0xd5   :  { %1714 = vmatpush2.bf16.msra.mxu1 %v4206_v42  ;;  %1758 = vmatprep.subr.bf16.mxu0 %v4217_v45  ;;  %v4287_v42 = vld [vmem:[#allocation5 + $0x528] ss:$16 sps:$4 sm:$0xff]   ;;  %v4521_v45 = vld [vmem:[#allocation2 + $0x78] ss:$28 sps:$4 sm:$0xff]  }
  0xd6   :  { %1809 = vmatprep.subr.bf16.mxu1 %v4214_v44  ;;  %v4290_v44 = vld [vmem:[#allocation5 + $0x508] ss:$16 sps:$4 sm:$0xff]  }
  0xd8   :  { %1716 = vmatmul.mubr.bf16.vlgmr.msra.gmra.mxu1 %v4730_v3  ;;  %1759 = vmatpush1.bf16.msra.mxu0 %v4215_v47  ;;  %v4230_v3 = vld [vmem:[#allocation5 + $0x488] ss:$16 sps:$4 sm:$0xff]  }
  0xd9   :  { %1810 = vmatpush1.bf16.msra.mxu1 %v4212_v46  ;;  %1760 = vmatprep.subr.bf16.mxu0 %v4223_v50  ;;  %v4293_v46 = vld [vmem:[#allocation8 + $0xe0] ss:$16 sps:$4 sm:$0xff]   ;;  %v4298_v47 = vld [vmem:[#allocation8 + $0xc4] ss:$16 sps:$4 sm:$0xff]  }
  0xda   :  { %1811 = vmatprep.subr.bf16.mxu1 %v4220_v48  ;;  %1725 = vmatprep.mubr.bf16.mxu1 %v4732_v9  ;;  %v4244_v9 = vld [vmem:[#allocation5 + $0x44c] ss:$16 sps:$4 sm:$0xff]   ;;  %v4296_v50 = vld [vmem:[#allocation8 + $0xc0] ss:$16 sps:$4 sm:$0xff]  }
  0xdb   :  { %v4522_v48 = vld [vmem:[#allocation2 + $0x18] ss:$28 sps:$4 sm:$0xff]  }
  0xdc   :  { %1761 = vmatpush1.bf16.msra.mxu0 %v4221_v53  ;;  %v4299_v53 = vld [vmem:[#allocation8 + $0xa0] ss:$16 sps:$4 sm:$0xff]  }
  0xdd   :  { %1812 = vmatpush1.bf16.msra.mxu1 %v4218_v52  ;;  %1762 = vmatprep.subr.bf16.mxu0 %v4229_v55  ;;  %v4301_v52 = vld [vmem:[#allocation8 + $0xa4] ss:$16 sps:$4 sm:$0xff]  }
  0xde   :  { %1813 = vmatprep.subr.bf16.mxu1 %v4226_v54  ;;  %v4304_v54 = vld [vmem:[#allocation8 + $0x84] ss:$16 sps:$4 sm:$0xff]  }
  0xdf   :  { %v4523_v55 = vld [vmem:[#allocation2 + $0x50] ss:$28 sps:$4 sm:$0xff]  }
  0xe0   :  { %1726 = vmatmul.mubr.bf16.gmra.mxu1 %v4736_v14  ;;  %1763 = vmatpush2.bf16.msra.mxu0 %v4227_v57  ;;  %v4245_v14 = vld [vmem:[#allocation5 + $0x388] ss:$16 sps:$4 sm:$0xff]  }
  0xe1   :  { %1814 = vmatpush1.bf16.msra.mxu1 %v4224_v56  ;;  %1764 = vmatprep.subr.bf16.mxu0 %v4235_v58  ;;  %v4359_v56 = vld [vmem:[#allocation8 + $0x2e0] ss:$16 sps:$4 sm:$0xff]   ;;  %v4361_v57 = vld [vmem:[#allocation8 + $0x2e4] ss:$16 sps:$4 sm:$0xff]  }
  0xe2   :  { %1815 = vmatprep.subr.bf16.mxu1 %v4232_v51  ;;  %1735 = vmatprep.mubr.bf16.mxu1 %v4738_v18  ;;  %v4256_v18 = vld [vmem:[#allocation5 + $0x40c] ss:$16 sps:$4 sm:$0xff]   ;;  %v4305_v51 = vld [vmem:[#allocation8 + $0x60] ss:$16 sps:$4 sm:$0xff]   ;;  %v4310_v58 = vld [vmem:[#allocation8 + $0x44] ss:$16 sps:$4 sm:$0xff]  }
  0xe4   :  { %1765 = vmatpush2.bf16.msra.mxu0 %v4233_v59  ;;  %v4313_v59 = vld [vmem:[#allocation8 + $0x24] ss:$16 sps:$4 sm:$0xff]  }
  0xe5   :  { %1816 = vmatpush1.bf16.msra.mxu1 %v4230_v3  ;;  %1766 = vmatprep.subr.bf16.mxu0 %v4241_v61  ;;  %v4367_v3 = vld [vmem:[#allocation8 + $0x2c4] ss:$16 sps:$4 sm:$0xff]  }
  0xe6   :  { %1817 = vmatprep.subr.bf16.mxu1 %v4238_v60  ;;  %v4371_v60 = vld [vmem:[#allocation8 + $0x2a0] ss:$16 sps:$4 sm:$0xff]   ;;  %v4373_v61 = vld [vmem:[#allocation8 + $0x2a4] ss:$16 sps:$4 sm:$0xff]  }
  0xe8   :  { %1736 = vmatmul.mubr.bf16.gmra.mxu1 %v4742_v22  ;;  %1767 = vmatpush2.bf16.msra.mxu0 %v4239_v63  ;;  %v4260_v22 = vld [vmem:[#allocation5 + $0x5e8] ss:$16 sps:$4 sm:$0xff]  }
  0xe9   :  { %1818 = vmatpush1.bf16.msra.mxu1 %v4236_v62  ;;  %1768 = vmatprep.subr.bf16.mxu0 %v4247_v0  ;;  %v4311_v62 = vld [vmem:[#allocation8 + $0x20] ss:$16 sps:$4 sm:$0xff]   ;;  %v4316_v63 = vld [vmem:[#allocation8 + $0x4] ss:$16 sps:$4 sm:$0xff]  }
  0xea   :  { %1819 = vmatprep.subr.bf16.mxu1 %v4244_v9  ;;  %1841 = vmatprep.mubr.bf16.mxu1 %v4746_v33  ;;  %v4266_v33 = vld [vmem:[#allocation5 + $0x5c8] ss:$16 sps:$4 sm:$0xff]   ;;  %v4314_v0 = vld [vmem:[#allocation8] ss:$16 sps:$4 sm:$0xff]  }
  0xeb   :  { %v4379_v9 = vld [vmem:[#allocation8 + $0x284] ss:$16 sps:$4 sm:$0xff]  }
  0xec   :  { %1769 = vmatpush2.bf16.msra.mxu0 %v4245_v14  ;;  %v4383_v14 = vld [vmem:[#allocation8 + $0x260] ss:$16 sps:$4 sm:$0xff]  }
  0xed   :  { %1820 = vmatpush1.bf16.msra.mxu1 %v4242_v1  ;;  %1770 = vmatprep.subr.bf16.mxu0 %v4253_v4  ;;  %v4319_v1 = vld [vmem:[#allocation8 + $0x1e4] ss:$16 sps:$4 sm:$0xff]   ;;  %v4317_v4 = vld [vmem:[#allocation8 + $0x1e0] ss:$16 sps:$4 sm:$0xff]  }
  0xee   :  { %1821 = vmatprep.subr.bf16.mxu1 %v4250_v2  ;;  %v4385_v2 = vld [vmem:[#allocation8 + $0x264] ss:$16 sps:$4 sm:$0xff]  }
  0xf0   :  { %1771 = vmatpush2.bf16.msra.mxu0 %v4251_v5  ;;  %v4389_v5 = vld [vmem:[#allocation8 + $0x240] ss:$16 sps:$4 sm:$0xff]  }
  0xf1   :  { %1822 = vmatpush1.bf16.msra.mxu1 %v4248_v49  ;;  %1772 = vmatprep.subr.bf16.mxu0 %v4259_v6  ;;  %v4322_v49 = vld [vmem:[#allocation8 + $0x1c4] ss:$16 sps:$4 sm:$0xff]   ;;  %v4320_v6 = vld [vmem:[#allocation8 + $0x1c0] ss:$16 sps:$4 sm:$0xff]  }
  0xf2   :  { %1823 = vmatprep.subr.bf16.mxu1 %v4256_v18  ;;  %v4391_v18 = vld [vmem:[#allocation8 + $0x244] ss:$16 sps:$4 sm:$0xff]  }
  0xf4   :  { %1773 = vmatpush2.bf16.msra.mxu0 %v4257_v8  ;;  %v4395_v8 = vld [vmem:[#allocation8 + $0x220] ss:$16 sps:$4 sm:$0xff]  }
  0xf5   :  { %1824 = vmatpush1.bf16.msra.mxu1 %v4254_v7  ;;  %1774 = vmatprep.subr.bf16.mxu0 %v4265_v11  ;;  %v4325_v7 = vld [vmem:[#allocation8 + $0x1a4] ss:$16 sps:$4 sm:$0xff]   ;;  %v4323_v11 = vld [vmem:[#allocation8 + $0x1a0] ss:$16 sps:$4 sm:$0xff]  }
  0xf6   :  { %1825 = vmatprep.subr.bf16.mxu1 %v4262_v10  ;;  %v4397_v10 = vld [vmem:[#allocation8 + $0x224] ss:$16 sps:$4 sm:$0xff]  }
  0xf8   :  { %1775 = vmatpush2.bf16.msra.mxu0 %v4263_v13 }
  0xf9   :  { %1826 = vmatpush2.bf16.msra.mxu1 %v4260_v22  ;;  %1776 = vmatprep.subr.bf16.mxu0 %v4271_v16  ;;  %v4328_v22 = vld [vmem:[#allocation8 + $0x184] ss:$16 sps:$4 sm:$0xff]  }
  0xfa   :  { %1827 = vmatprep.subr.bf16.mxu1 %v4268_v15  ;;  %v4403_v15 = vld [vmem:[#allocation8 + $0x204] ss:$16 sps:$4 sm:$0xff]  }
  0xfc   :  { %1777 = vmatpush2.bf16.msra.mxu0 %v4269_v17  ;;  %v4401_v17 = vld [vmem:[#allocation8 + $0x200] ss:$16 sps:$4 sm:$0xff]  }
  0xfd   :  { %1828 = vmatpush2.bf16.msra.mxu1 %v4266_v33  ;;  %1886 = vmatprep.subr.bf16.mxu0 %v4277_v21  ;;  %v4326_v33 = vld [vmem:[#allocation8 + $0x180] ss:$16 sps:$4 sm:$0xff]   ;;  %v4409_v21 = vld [vmem:[#allocation8 + $0x3e4] ss:$16 sps:$4 sm:$0xff]  }
  0xfe   :  { %1829 = vmatprep.subr.bf16.mxu1 %v4274_v20  ;;  %v4331_v20 = vld [vmem:[#allocation8 + $0x164] ss:$16 sps:$4 sm:$0xff]  }
  0xff   :  { %1779 = vmatmul.mubr.bf16.vlgmr.msra.gmra.mxu0 %v4517_v30 }
 0x100   :  { %1887 = vmatpush1.bf16.msra.mxu0 %v4275_v24  ;;  %1788 = vmatprep.mubr.bf16.mxu0 %v4518_v32  ;;  %v4329_v24 = vld [vmem:[#allocation8 + $0x160] ss:$16 sps:$4 sm:$0xff]  }
 0x101   :  { %1830 = vmatpush2.bf16.msra.mxu1 %v4272_v23  ;;  %2761 = vmatprep.subr.bf16.mxu0 %v4295_v28  ;;  %v4334_v28 = vld [vmem:[#allocation8 + $0x144] ss:$16 sps:$4 sm:$0xff]   ;;  %v4332_v32 = vld [vmem:[#allocation8 + $0x140] ss:$16 sps:$4 sm:$0xff]  }
 0x102   :  { %1831 = vmatprep.subr.bf16.mxu1 %v4280_v25  ;;  %v4407_v25 = vld [vmem:[#allocation8 + $0x3e0] ss:$16 sps:$4 sm:$0xff]  }
 0x105   :  { %1832 = vmatpush2.bf16.msra.mxu1 %v4278_v29  ;;  %v4415_v29 = vld [vmem:[#allocation8 + $0x3c4] ss:$16 sps:$4 sm:$0xff]  }
 0x106   :  { %1833 = vmatprep.subr.bf16.mxu1 %v4283_v34  ;;  %v4413_v34 = vld [vmem:[#allocation8 + $0x3c0] ss:$16 sps:$4 sm:$0xff]  }
 0x107   :  { %1789 = vmatmul.mubr.bf16.gmra.mxu0 %v4519_v39  ;;  %v4335_v39 = vld [vmem:[#allocation8 + $0x120] ss:$16 sps:$4 sm:$0xff]  }
 0x108   :  { %1798 = vmatprep.mubr.bf16.mxu0 %v4520_v40  ;;  %v4419_v40 = vld [vmem:[#allocation8 + $0x3a0] ss:$16 sps:$4 sm:$0xff]  }
 0x109   :  { %1834 = vmatpush2.bf16.msra.mxu1 %v4281_v35  ;;  %v4337_v35 = vld [vmem:[#allocation8 + $0x124] ss:$16 sps:$4 sm:$0xff]  }
 0x10a   :  { %1835 = vmatprep.subr.bf16.mxu1 %v4286_v36  ;;  %v4421_v36 = vld [vmem:[#allocation8 + $0x3a4] ss:$16 sps:$4 sm:$0xff]  }
 0x10d   :  { %1836 = vmatpush2.bf16.msra.mxu1 %v4284_v37 }
 0x10e   :  { %1837 = vmatprep.subr.bf16.mxu1 %v4289_v41  ;;  %v4340_v41 = vld [vmem:[#allocation8 + $0x104] ss:$16 sps:$4 sm:$0xff]  }
 0x10f   :  { %1799 = vmatmul.mubr.bf16.gmra.mxu0 %v4521_v45  ;;  %v4338_v45 = vld [vmem:[#allocation8 + $0x100] ss:$16 sps:$4 sm:$0xff]  }
 0x110   :  { %1904 = vmatprep.mubr.bf16.mxu0 %v4664_v27 }
 0x111   :  { %1838 = vmatpush2.bf16.msra.mxu1 %v4287_v42  ;;  %v4424_v42 = vld [vmem:[#allocation8 + $0x384] ss:$16 sps:$4 sm:$0xff]  }
 0x112   :  { %1839 = vmatprep.subr.bf16.mxu1 %v4292_v43 }
 0x115   :  { %1840 = vmatpush2.bf16.msra.mxu1 %v4290_v44 }
 0x116   :  { %2824 = vmatprep.subr.bf16.mxu1 %v4361_v57 }
 0x117   :  { %3695 = vmatmul.mubr.msk.bf16.vlgmr.msra.gmra.mxu0 %vm1421_vm0, %v4522_v48  ;;  %v4427_v48 = vld [vmem:[#allocation8 + $0x364] ss:$16 sps:$4 sm:$0xff]  }
 0x118   :  { %1842 = vmatmul.mubr.bf16.vlgmr.msra.gmra.mxu1 %v4755_v12  ;;  %1914 = vmatprep.mubr.bf16.mxu0 %v4664_v27  ;;  %v4302_v12 = vld [vmem:[#allocation8 + $0x80] ss:$16 sps:$4 sm:$0xff]  }
 0x119   :  { %1851 = vmatprep.mubr.bf16.mxu1 %v4757_v19  ;;  %2762 = vmatpush1.bf16.msra.mxu0 %v4293_v46  ;;  %v4307_v19 = vld [vmem:[#allocation8 + $0x64] ss:$16 sps:$4 sm:$0xff]   ;;  %v4422_v46 = vld [vmem:[#allocation8 + $0x380] ss:$16 sps:$4 sm:$0xff]  }
 0x11a   :  { %2763 = vmatprep.subr.bf16.mxu0 %v4298_v47  ;;  %2825 = vmatpush1.bf16.msra.mxu1 %v4359_v56  ;;  %v4343_v47 = vld [vmem:[#allocation8 + $0xec] ss:$16 sps:$4 sm:$0xff]   ;;  %v4433_v56 = vld [vmem:[#allocation8 + $0x324] ss:$16 sps:$4 sm:$0xff]  }
 0x11b   :  { %2826 = vmatprep.subr.bf16.mxu1 %v4367_v3 }
 0x11d   :  { %2764 = vmatpush1.bf16.msra.mxu0 %v4296_v50 }
 0x11e   :  { %2765 = vmatprep.subr.bf16.mxu0 %v4301_v52 }
 0x11f   :  { %3696 = vmatmul.mubr.msk.bf16.gmra.mxu0 %vm1421_vm0, %v4523_v55 }
 0x120   :  { %1852 = vmatmul.mubr.bf16.gmra.mxu1 %v4761_v26  ;;  %1924 = vmatprep.mubr.bf16.mxu0 %v4664_v27  ;;  %v4524_v26 = vld [vmem:[#allocation2 + $0x88] ss:$28 sps:$4 sm:$0xff]   ;;  %v4308_v27 = vld [vmem:[#allocation8 + $0x40] ss:$16 sps:$4 sm:$0xff]  }
 0x121   :  { %1861 = vmatprep.mubr.bf16.mxu1 %v4763_v31  ;;  %2766 = vmatpush1.bf16.msra.mxu0 %v4299_v53  ;;  %v4365_v31 = vld [vmem:[#allocation8 + $0x2c0] ss:$16 sps:$4 sm:$0xff]  }
 0x122   :  { %2767 = vmatprep.subr.bf16.mxu0 %v4304_v54  ;;  %2827 = vmatpush1.bf16.msra.mxu1 %v4365_v31  ;;  %v4425_v53 = vld [vmem:[#allocation8 + $0x360] ss:$16 sps:$4 sm:$0xff]   ;;  %v4430_v54 = vld [vmem:[#allocation8 + $0x344] ss:$16 sps:$4 sm:$0xff]  }
 0x123   :  { %2828 = vmatprep.subr.bf16.mxu1 %v4373_v61 }
 0x125   :  { %2768 = vmatpush1.bf16.msra.mxu0 %v4302_v12 }
 0x126   :  { %2769 = vmatprep.subr.bf16.mxu0 %v4307_v19  ;;  %2829 = vmatpush1.bf16.msra.mxu1 %v4371_v60  ;;  %v4428_v19 = vld [vmem:[#allocation8 + $0x340] ss:$16 sps:$4 sm:$0xff]  }
 0x127   :  { %3697 = vmatmul.mubr.msk.bf16.gmra.mxu0 %vm1421_vm0, %v4524_v26  ;;  %2830 = vmatprep.subr.bf16.mxu1 %v4379_v9  ;;  %v4436_v26 = vld [vmem:[#allocation8 + $0x304] ss:$16 sps:$4 sm:$0xff]  }
 0x128   :  { %1862 = vmatmul.mubr.bf16.gmra.mxu1 %v4767_v38  ;;  %v4377_v38 = vld [vmem:[#allocation8 + $0x280] ss:$16 sps:$4 sm:$0xff]  }
 0x129   :  { %2770 = vmatpush1.bf16.msra.mxu0 %v4305_v51 }
 0x12a   :  { %2771 = vmatprep.subr.bf16.mxu0 %v4310_v58  ;;  %2831 = vmatpush1.bf16.msra.mxu1 %v4377_v38  ;;  %v4431_v58 = vld [vmem:[#allocation8 + $0x320] ss:$16 sps:$4 sm:$0xff]   ;;  %v316_v38 = vlaneseq }
 0x12b   :  { %2832 = vmatprep.subr.bf16.mxu1 %v4385_v2 }
 0x12d   :  { %2772 = vmatpush1.bf16.msra.mxu0 %v4308_v27  ;;  %v4434_v27 = vld [vmem:[#allocation8 + $0x300] ss:$16 sps:$4 sm:$0xff]  }
 0x12e   :  { %2773 = vmatprep.subr.bf16.mxu0 %v4313_v59  ;;  %2833 = vmatpush1.bf16.msra.mxu1 %v4383_v14  ;;  %v4439_v59 = vld [vmem:[#allocation8 + $0x2ec] ss:$16 sps:$4 sm:$0xff]  }
 0x12f   :  { %2834 = vmatprep.subr.bf16.mxu1 %v4391_v18 }
 0x131   :  { %2774 = vmatpush1.bf16.msra.mxu0 %v4311_v62 }
 0x132   :  { %2775 = vmatprep.subr.bf16.mxu0 %v4316_v63  ;;  %2835 = vmatpush1.bf16.msra.mxu1 %v4389_v5 }
 0x133   :  { %2836 = vmatprep.subr.bf16.mxu1 %v4397_v10 }
 0x135   :  { %2776 = vmatpush1.bf16.msra.mxu0 %v4314_v0 }
 0x136   :  { %2777 = vmatprep.subr.bf16.mxu0 %v4319_v1  ;;  %2837 = vmatpush1.bf16.msra.mxu1 %v4395_v8  ;;  %v4812_v1 = vshrl.u32 %v316_v38, 7 }
 0x137   :  { %2838 = vmatprep.subr.bf16.mxu1 %v4403_v15 }
 0x139   :  { %2778 = vmatpush2.bf16.msra.mxu0 %v4317_v4  ;;  %v322_v4 = vsub.s32 1, %v4812_v1 }
 0x13a   :  { %2779 = vmatprep.subr.bf16.mxu0 %v4322_v49  ;;  %2839 = vmatpush1.bf16.msra.mxu1 %v4401_v17  ;;  %v318_v49 = vsub.s32 0, %v4812_v1 }
 0x13b   :  { %2840 = vmatprep.subr.bf16.mxu1 %v4409_v21 }
 0x13d   :  { %2780 = vmatpush2.bf16.msra.mxu0 %v4320_v6  ;;  %v4816_v6 = vld [vmem:[#allocation7] sm:$0xf] }
 0x13e   :  { %2781 = vmatprep.subr.bf16.mxu0 %v4325_v7  ;;  %2841 = vmatpush2.bf16.msra.mxu1 %v4407_v25  ;;  %v4821_v7 = vrot.slane %v4816_v6, %v322_v4  ;;  %v319_v8 = vrot.slane %v4816_v6, %v318_v49 }
 0x13f   :  { %2842 = vmatprep.subr.bf16.mxu1 %v4415_v29  ;;  %v1465_v43 = vpop.f32.mrf.mxu0 }
 0x140   :  { %v4788_v13 = vpop.f32.mrf.mxu1 }
 0x141   :  { %2782 = vmatpush2.bf16.msra.mxu0 %v4323_v11  ;;  %v1467_v50 = vpop.f32.mrf.mxu0 }
 0x142   :  { %v4790_v16 = vpop.f32.mrf.mxu1  ;;  %2783 = vmatprep.subr.bf16.mxu0 %v4328_v22  ;;  %2843 = vmatpush2.bf16.msra.mxu1 %v4413_v34  ;;  %v1468_v15 = vadd.f32 %v1467_v50, %v4821_v7 }
 0x143   :  { %2844 = vmatprep.subr.bf16.mxu1 %v4421_v36  ;;  %v1469_v55 = vpop.f32.mrf.mxu0 }
 0x144   :  { %v4792_v23 = vpop.f32.mrf.mxu1  ;;  %v1531_v25 = vadd.f32 %v4790_v16, %v1468_v15 }
 0x145   :  { %2784 = vmatpush2.bf16.msra.mxu0 %v4326_v33  ;;  %v1471_v57 = vpop.f32.mrf.mxu0  ;;  %v1466_v33 = vadd.f32 %v1465_v43, %v319_v8 }
 0x146   :  { %2785 = vmatprep.subr.bf16.mxu0 %v4331_v20  ;;  %v4794_v30 = vpop.f32.mrf.mxu1  ;;  %2845 = vmatpush2.bf16.msra.mxu1 %v4419_v40  ;;  %v1470_v20 = vadd.f32 %v1469_v55, %v319_v8 }
 0x147   :  { %2846 = vmatprep.subr.bf16.mxu1 %v4424_v42  ;;  %v1475_v31 = vpop.f32.mrf.mxu0  ;;  %v1529_v29 = vadd.f32 %v4788_v13, %v1466_v33 }
 0x148   :  { %v4796_v37 = vpop.f32.mrf.mxu1  ;;  %v1533_v34 = vadd.f32 %v4792_v23, %v1470_v20 }
 0x149   :  { %2786 = vmatpush2.bf16.msra.mxu0 %v4329_v24  ;;  %v1477_v60 = vpop.f32.mrf.mxu0 }
 0x14a   :  { %2787 = vmatprep.subr.bf16.mxu0 %v4334_v28  ;;  %v4798_v44 = vpop.f32.mrf.mxu1  ;;  %2847 = vmatpush2.bf16.msra.mxu1 %v4422_v46  ;;  %v1472_v28 = vadd.f32 %v1471_v57, %v4821_v7  ;;  %v1478_v42 = vadd.f32 %v1477_v60, %v4821_v7 }
 0x14b   :  { %2848 = vmatprep.subr.bf16.mxu1 %v4427_v48  ;;  %v1479_v62 = vpop.f32.mrf.mxu0 }
 0x14c   :  { %v4800_v52 = vpop.f32.mrf.mxu1  ;;  %v1541_v23 = vadd.f32 %v4798_v44, %v1478_v42 }
 0x14d   :  { %2788 = vmatpush2.bf16.msra.mxu0 %v4332_v32  ;;  %v1481_v9 = vpop.f32.mrf.mxu0 }
 0x14e   :  { %2789 = vmatprep.subr.bf16.mxu0 %v4337_v35  ;;  %2849 = vmatpush2.bf16.msra.mxu1 %v4425_v53  ;;  %v4802_v12 = vpop.f32.mrf.mxu1  ;;  %v1482_v55 = vadd.f32 %v1481_v9, %v4821_v7 }
 0x14f   :  { %2850 = vmatprep.subr.bf16.mxu1 %v4430_v54  ;;  %v1485_v14 = vpop.f32.mrf.mxu0 }
 0x150   :  { %v4804_v51 = vpop.f32.mrf.mxu1 }
 0x151   :  { %2790 = vmatpush2.bf16.msra.mxu0 %v4335_v39  ;;  %v1487_v5 = vpop.f32.mrf.mxu0 }
 0x152   :  { %2791 = vmatprep.subr.bf16.mxu0 %v4340_v41  ;;  %2851 = vmatpush2.bf16.msra.mxu1 %v4428_v19  ;;  %v4806_v3 = vpop.f32.mrf.mxu1  ;;  %v1535_v41 = vadd.f32 %v4794_v30, %v1472_v28  ;;  %v1488_v44 = vadd.f32 %v1487_v5, %v4821_v7 }
 0x153   :  { %2852 = vmatprep.subr.bf16.mxu1 %v4433_v56  ;;  %v1489_v10 = vpop.f32.mrf.mxu0 }
 0x154   :  { %v4808_v61 = vpop.f32.mrf.mxu1  ;;  %v1490_v33 = vadd.f32 %v1489_v10, %v319_v8  ;;  %v1551_v5 = vadd.f32 %v4806_v3, %v1488_v44 }
 0x155   :  { %2792 = vmatpush2.bf16.msra.mxu0 %v4338_v45  ;;  %v1491_v17 = vpop.f32.mrf.mxu0  ;;  %v1476_v45 = vadd.f32 %v1475_v31, %v319_v8 }
 0x156   :  { %2887 = vmatprep.subr.bf16.mxu0 %v4343_v47  ;;  %2853 = vmatpush2.bf16.msra.mxu1 %v4431_v58  ;;  %v4810_v63 = vpop.f32.mrf.mxu1  ;;  %v1480_v47 = vadd.f32 %v1479_v62, %v319_v8 }
 0x157   :  { %2854 = vmatprep.subr.bf16.mxu1 %v4436_v26  ;;  %v1539_v56 = vadd.f32 %v4796_v37, %v1476_v45  ;;  %v1486_v37 = vadd.f32 %v1485_v14, %v319_v8 }
 0x158   :  { %v1654_v0 = vpop.f32.mrf.mxu1  ;;  %v1543_v58 = vadd.f32 %v4800_v52, %v1480_v47  ;;  %v4346_v52 = vld [vmem:[#allocation8 + $0xcc] ss:$16 sps:$4 sm:$0xff]  }
 0x15a   :  { %2855 = vmatpush2.bf16.msra.mxu1 %v4434_v27  ;;  %v1656_v2 = vpop.f32.mrf.mxu1 }
 0x15b   :  { %2950 = vmatprep.subr.bf16.mxu1 %v4439_v59 }
 0x15c   :  { %v1658_v18 = vpop.f32.mrf.mxu1 }
 0x15e   :  { %v1660_v11 = vpop.f32.mrf.mxu1 }
 0x160   :  { %v1664_v22 = vpop.f32.mrf.mxu1 }
 0x162   :  { %v1666_v24 = vpop.f32.mrf.mxu1 }
 0x164   :  { %v1668_v40 = vpop.f32.mrf.mxu1 }
 0x166   :  { %v1670_v54 = vpop.f32.mrf.mxu1 }
 0x168   :  { %v1674_v62 = vpop.f32.mrf.mxu1 }
 0x17f   :  { %v1591_v21 = vpop.f32.mrf.mxu0 }
 0x180   :  { %v1592_v36 = vadd.f32 %v1591_v21, %v1529_v29  ;;  %v1676_v29 = vpop.f32.mrf.mxu1 }
 0x181   :  { %v1593_v32 = vpop.f32.mrf.mxu0 }
 0x182   :  { %v1594_v35 = vadd.f32 %v1593_v32, %v1531_v25  ;;  %v1655_v53 = vadd.f32 %v1654_v0, %v1592_v36  ;;  %v1545_v0 = vadd.f32 %v4802_v12, %v1482_v55  ;;  %v1492_v32 = vadd.f32 %v1491_v17, %v4821_v7  ;;  %v1678_v42 = vpop.f32.mrf.mxu1  ;;  %v4355_v55 = vld [vmem:[#allocation8 + $0x6c] ss:$16 sps:$4 sm:$0xff]  }
 0x183   :  { %v1595_v39 = vpop.f32.mrf.mxu0  ;;  %v1553_v36 = vadd.f32 %v4808_v61, %v1490_v33  ;;  %v4386_v33 = vld [vmem:[#allocation8 + $0x1a8] ss:$16 sps:$4 sm:$0xff]  }
 0x184   :  { %v1596_v43 = vadd.f32 %v1595_v39, %v1533_v34  ;;  %v1657_v16 = vadd.f32 %v1656_v2, %v1594_v35  ;;  %v1935_v59 = vmax.f32 %v1655_v53, 0.0  ;;  %v4344_v34 = vld [vmem:[#allocation8 + $0xc8] ss:$16 sps:$4 sm:$0xff]   ;;  %v1549_v35 = vadd.f32 %v4804_v51, %v1486_v37 }
 0x185   :  { %v1597_v46 = vpop.f32.mrf.mxu0  ;;  %v1555_v7 = vadd.f32 %v4810_v63, %v1492_v32  ;;  %v4347_v51 = vld [vmem:[#allocation8 + $0xa8] ss:$16 sps:$4 sm:$0xff]  }
 0x186   :  { %v1659_v48 = vadd.f32 %v1658_v18, %v1596_v43  ;;  %v1598_v50 = vadd.f32 %v1597_v46, %v1535_v41  ;;  %v1936_v26 = vmax.f32 %v1657_v16, 0.0  ;;  %v4341_v18 = vld [vmem:[#allocation8 + $0xe8] ss:$16 sps:$4 sm:$0xff]   ;;  %v4352_v16 = vld [vmem:[#allocation8 + $0x8c] ss:$16 sps:$4 sm:$0xff]  }
 0x187   :  { %v1601_v13 = vpop.f32.mrf.mxu0 }
 0x188   :  { %v1661_v19 = vadd.f32 %v1660_v11, %v1598_v50  ;;  %v1939_v30 = vmax.f32 %v1659_v48, 0.0  ;;  %v1602_v60 = vadd.f32 %v1601_v13, %v1539_v56  ;;  %v1680_v13 = vpop.f32.mrf.mxu1 }
 0x189   :  { %v1603_v57 = vpop.f32.mrf.mxu0 }
 0x18a   :  { %v1940_v31 = vmax.f32 %v1661_v19, 0.0  ;;  %v1604_v27 = vadd.f32 %v1603_v57, %v1541_v23  ;;  %v4841_v11 = vpack.c.bf16 %v1939_v30, %v1935_v59  ;;  %v1665_v28 = vadd.f32 %v1664_v22, %v1602_v60  ;;  %v4364_v59 = vld [vmem:[#allocation8 + $0x2c] ss:$16 sps:$4 sm:$0xff]   ;;  %v4362_v60 = vld [vmem:[#allocation8 + $0x28] ss:$16 sps:$4 sm:$0xff]  }
 0x18b   :  { %v1605_v38 = vpop.f32.mrf.mxu0 }
 0x18c   :  { %v1606_v2 = vadd.f32 %v1605_v38, %v1543_v58  ;;  %v4839_v9 = vpack.c.bf16 %v1940_v31, %v1936_v26  ;;  %v1667_v20 = vadd.f32 %v1666_v24, %v1604_v27  ;;  %v4349_v24 = vld [vmem:[#allocation8 + $0xac] ss:$16 sps:$4 sm:$0xff]   ;;  %v1943_v41 = vmax.f32 %v1665_v28, 0.0  ;;  %v4353_v58 = vld [vmem:[#allocation8 + $0x68] ss:$16 sps:$4 sm:$0xff]  }
 0x18d   :  { %v1607_v15 = vpop.f32.mrf.mxu0  ;;  %v4358_v31 = vld [vmem:[#allocation8 + $0x4c] ss:$16 sps:$4 sm:$0xff]   ;;  %v4356_v27 = vld [vmem:[#allocation8 + $0x48] ss:$16 sps:$4 sm:$0xff]  }
 0x18e   :  { %v1669_v21 = vadd.f32 %v1668_v40, %v1606_v2  ;;  %v1608_v25 = vadd.f32 %v1607_v15, %v1545_v0  ;;  %2793 = vmatprep.mubr.bf16.mxu0 %v4839_v9  ;;  %v1944_v22 = vmax.f32 %v1667_v20, 0.0  ;;  %v4368_v38 = vld [vmem:[#allocation8 + $0x8] ss:$16 sps:$4 sm:$0xff]   ;;  %v4376_v0 = vld [vmem:[#allocation8 + $0x1ec] ss:$16 sps:$4 sm:$0xff]  }
 0x18f   :  { %v1611_v12 = vpop.f32.mrf.mxu0  ;;  %2794 = vmatmul.mubr.bf16.vlgmr.msra.gmra.mxu0 %v4841_v11  ;;  %v4374_v2 = vld [vmem:[#allocation8 + $0x1e8] ss:$16 sps:$4 sm:$0xff]   ;;  %v4388_v15 = vld [vmem:[#allocation8 + $0x1ac] ss:$16 sps:$4 sm:$0xff]  }
 0x190   :  { %v1671_v14 = vadd.f32 %v1670_v54, %v1608_v25  ;;  %2888 = vmatpush1.bf16.msra.mxu0 %v4341_v18  ;;  %v1947_v8 = vmax.f32 %v1669_v21, 0.0  ;;  %v1612_v43 = vadd.f32 %v1611_v12, %v1549_v35  ;;  %v4350_v54 = vld [vmem:[#allocation8 + $0x88] ss:$16 sps:$4 sm:$0xff]   ;;  %v4382_v18 = vld [vmem:[#allocation8 + $0x1cc] ss:$16 sps:$4 sm:$0xff]  }
 0x191   :  { %v1613_v10 = vpop.f32.mrf.mxu0  ;;  %2889 = vmatprep.subr.bf16.mxu0 %v4346_v52  ;;  %v4394_v20 = vld [vmem:[#allocation8 + $0x18c] ss:$16 sps:$4 sm:$0xff]   ;;  %v4392_v25 = vld [vmem:[#allocation8 + $0x188] ss:$16 sps:$4 sm:$0xff]  }
 0x192   :  { %v1948_v39 = vmax.f32 %v1671_v14, 0.0  ;;  %v1614_v40 = vadd.f32 %v1613_v10, %v1551_v5  ;;  %v4852_v47 = vpack.c.bf16 %v1947_v8, %v1943_v41  ;;  %v1675_v53 = vadd.f32 %v1674_v62, %v1612_v43  ;;  %v4370_v62 = vld [vmem:[#allocation8 + $0xc] ss:$16 sps:$4 sm:$0xff]   ;;  %v4398_v12 = vld [vmem:[#allocation8 + $0x168] ss:$16 sps:$4 sm:$0xff]  }
 0x193   :  { %v1615_v3 = vpop.f32.mrf.mxu0  ;;  %v4400_v28 = vld [vmem:[#allocation8 + $0x16c] ss:$16 sps:$4 sm:$0xff]  }
 0x194   :  { %v1616_v17 = vadd.f32 %v1615_v3, %v1553_v36  ;;  %2890 = vmatpush1.bf16.msra.mxu0 %v4344_v34  ;;  %v4850_v45 = vpack.c.bf16 %v1948_v39, %v1944_v22  ;;  %v1677_v61 = vadd.f32 %v1676_v29, %v1614_v40  ;;  %v1951_v30 = vmax.f32 %v1675_v53, 0.0  ;;  %v4406_v5 = vld [vmem:[#allocation8 + $0x14c] ss:$16 sps:$4 sm:$0xff]   ;;  %v4404_v34 = vld [vmem:[#allocation8 + $0x148] ss:$16 sps:$4 sm:$0xff]  }
 0x195   :  { %v1617_v46 = vpop.f32.mrf.mxu0  ;;  %2891 = vmatprep.subr.bf16.mxu0 %v4349_v24  ;;  %v4412_v10 = vld [vmem:[#allocation8 + $0x12c] ss:$16 sps:$4 sm:$0xff]   ;;  %v4410_v36 = vld [vmem:[#allocation8 + $0x128] ss:$16 sps:$4 sm:$0xff]  }
 0x196   :  { %v1679_v48 = vadd.f32 %v1678_v42, %v1616_v17  ;;  %v1618_v50 = vadd.f32 %v1617_v46, %v1555_v7  ;;  %2803 = vmatprep.mubr.bf16.mxu0 %v4850_v45  ;;  %v1952_v19 = vmax.f32 %v1677_v61, 0.0  ;;  %v4418_v40 = vld [vmem:[#allocation8 + $0x10c] ss:$16 sps:$4 sm:$0xff]   ;;  %v4416_v42 = vld [vmem:[#allocation8 + $0x108] ss:$16 sps:$4 sm:$0xff]   ;;  %v330_v46 = vsub.s32 3, %v4812_v1 }
 0x197   :  { %2804 = vmatmul.mubr.bf16.gmra.mxu0 %v4852_v47 }
 0x198   :  { %v1681_v63 = vadd.f32 %v1680_v13, %v1618_v50  ;;  %2892 = vmatpush1.bf16.msra.mxu0 %v4347_v51  ;;  %v1955_v23 = vmax.f32 %v1679_v48, 0.0  ;;  %v4863_v44 = vpop.f32.mrf.mxu1  ;;  %v4880_v53 = vrot.slane %v4816_v6, %v330_v46 }
 0x199   :  { %2893 = vmatprep.subr.bf16.mxu0 %v4352_v16  ;;  %v326_v16 = vsub.s32 2, %v4812_v1 }
 0x19a   :  { %v1956_v56 = vmax.f32 %v1681_v63, 0.0  ;;  %v4858_v26 = vpack.c.bf16 %v1955_v23, %v1951_v30  ;;  %v1719_v37 = vpop.f32.mrf.mxu1 }
 0x19b   :  { %v4885_v13 = vrot.slane %v4816_v6, %v326_v16 }
 0x19c   :  { %2894 = vmatpush1.bf16.msra.mxu0 %v4350_v54  ;;  %v4856_v57 = vpack.c.bf16 %v1956_v56, %v1952_v19  ;;  %v1721_v52 = vpop.f32.mrf.mxu1 }
 0x19d   :  { %2895 = vmatprep.subr.bf16.mxu0 %v4355_v55  ;;  %v1718_v23 = vadd.f32 %v4863_v44, %v4885_v13  ;;  %v1722_v56 = vadd.f32 %v1721_v52, %v4885_v13 }
 0x19e   :  { %2813 = vmatprep.mubr.bf16.mxu0 %v4856_v57  ;;  %v1723_v21 = vpop.f32.mrf.mxu1 }
 0x19f   :  { %2814 = vmatmul.mubr.bf16.gmra.mxu0 %v4858_v26 }
 0x1a0   :  { %2896 = vmatpush1.bf16.msra.mxu0 %v4353_v58  ;;  %2919 = vmatprep.mubr.bf16.mxu0 %v4839_v9  ;;  %v4380_v9 = vld [vmem:[#allocation8 + $0x1c8] ss:$16 sps:$4 sm:$0xff]   ;;  %v1727_v29 = vpop.f32.mrf.mxu1 }
 0x1a1   :  { %2897 = vmatprep.subr.bf16.mxu0 %v4358_v31 }
 0x1a2   :  { %v1729_v32 = vpop.f32.mrf.mxu1 }
 0x1a3   :  { %v1730_v44 = vadd.f32 %v1729_v32, %v4880_v53 }
 0x1a4   :  { %2898 = vmatpush1.bf16.msra.mxu0 %v4356_v27  ;;  %v1731_v8 = vpop.f32.mrf.mxu1  ;;  %v1724_v27 = vadd.f32 %v1723_v21, %v4880_v53 }
 0x1a5   :  { %2899 = vmatprep.subr.bf16.mxu0 %v4364_v59 }
 0x1a6   :  { %v1733_v39 = vpop.f32.mrf.mxu1 }
 0x1a8   :  { %2900 = vmatpush1.bf16.msra.mxu0 %v4362_v60  ;;  %v4865_v43 = vpop.f32.mrf.mxu1 }
 0x1a9   :  { %2901 = vmatprep.subr.bf16.mxu0 %v4370_v62 }
 0x1aa   :  { %v1739_v17 = vpop.f32.mrf.mxu1 }
 0x1ac   :  { %2902 = vmatpush1.bf16.msra.mxu0 %v4368_v38  ;;  %v4873_v48 = vpop.f32.mrf.mxu1 }
 0x1ad   :  { %2903 = vmatprep.subr.bf16.mxu0 %v4376_v0 }
 0x1b0   :  { %2904 = vmatpush2.bf16.msra.mxu0 %v4374_v2 }
 0x1b1   :  { %2905 = vmatprep.subr.bf16.mxu0 %v4382_v18  ;;  %v1728_v18 = vadd.f32 %v1727_v29, %v4885_v13 }
 0x1b4   :  { %2906 = vmatpush2.bf16.msra.mxu0 %v4380_v9 }
 0x1b5   :  { %2907 = vmatprep.subr.bf16.mxu0 %v4388_v15 }
 0x1b8   :  { %2908 = vmatpush2.bf16.msra.mxu0 %v4386_v33 }
 0x1b9   :  { %2909 = vmatprep.subr.bf16.mxu0 %v4394_v20 }
 0x1bc   :  { %2910 = vmatpush2.bf16.msra.mxu0 %v4392_v25  ;;  %v1732_v25 = vadd.f32 %v1731_v8, %v4885_v13 }
 0x1bd   :  { %2911 = vmatprep.subr.bf16.mxu0 %v4400_v28 }
 0x1bf   :  { %v1780_v14 = vpop.f32.mrf.mxu0 }
 0x1c0   :  { %2912 = vmatpush2.bf16.msra.mxu0 %v4398_v12  ;;  %v1781_v6 = vadd.f32 %v1780_v14, %v1718_v23 }
 0x1c1   :  { %v1782_v35 = vpop.f32.mrf.mxu0  ;;  %2913 = vmatprep.subr.bf16.mxu0 %v4406_v5  ;;  %v1734_v5 = vadd.f32 %v1733_v39, %v4880_v53  ;;  %v1738_v39 = vadd.f32 %v4865_v43, %v4885_v13 }
 0x1c3   :  { %v1784_v24 = vpop.f32.mrf.mxu0 }
 0x1c4   :  { %2914 = vmatpush2.bf16.msra.mxu0 %v4404_v34  ;;  %v1785_v59 = vadd.f32 %v1784_v24, %v1722_v56  ;;  %v4442_v56 = vld [vmem:[#allocation8 + $0x2cc] ss:$16 sps:$4 sm:$0xff]  }
 0x1c5   :  { %v1786_v22 = vpop.f32.mrf.mxu0  ;;  %2915 = vmatprep.subr.bf16.mxu0 %v4412_v10 }
 0x1c6   :  { %v1787_v2 = vadd.f32 %v1786_v22, %v1724_v27  ;;  %v1742_v27 = vadd.f32 %v4873_v48, %v4885_v13 }
 0x1c7   :  { %v1790_v41 = vpop.f32.mrf.mxu0 }
 0x1c8   :  { %2916 = vmatpush2.bf16.msra.mxu0 %v4410_v36  ;;  %v1791_v32 = vadd.f32 %v1790_v41, %v1728_v18 }
 0x1c9   :  { %v1792_v3 = vpop.f32.mrf.mxu0  ;;  %2917 = vmatprep.subr.bf16.mxu0 %v4418_v40 }
 0x1ca   :  { %v1793_v28 = vadd.f32 %v1792_v3, %v1730_v44 }
 0x1cb   :  { %v1794_v7 = vpop.f32.mrf.mxu0 }
 0x1cc   :  { %2918 = vmatpush2.bf16.msra.mxu0 %v4416_v42 }
 0x1cd   :  { %v1796_v51 = vpop.f32.mrf.mxu0 }
 0x1ce   :  { %v1797_v23 = vadd.f32 %v1796_v51, %v1734_v5 }
 0x1cf   :  { %2920 = vmatmul.mubr.bf16.vlgmr.msra.gmra.mxu0 %v4841_v11  ;;  %v4870_v61 = vpop.f32.mrf.mxu0  ;;  %v4889_v11 = vpop.f32.mrf.mxu1 }
 0x1d0   :  { %2929 = vmatprep.mubr.bf16.mxu0 %v4850_v45  ;;  %v1720_v45 = vadd.f32 %v1719_v37, %v4880_v53 }
 0x1d1   :  { %v4875_v50 = vpop.f32.mrf.mxu0 }
 0x1d2   :  { %v1783_v30 = vadd.f32 %v1782_v35, %v1720_v45  ;;  %v1795_v35 = vadd.f32 %v1794_v7, %v1732_v25 }
 0x1d3   :  { %v4887_v63 = vpop.f32.mrf.mxu0 }
 0x1d4   :  { %v1805_v18 = vadd.f32 %v4887_v63, %v1742_v27  ;;  %v4448_v63 = vld [vmem:[#allocation8 + $0x28c] ss:$16 sps:$4 sm:$0xff]  }
 0x1d5   :  { %v4891_v54 = vpop.f32.mrf.mxu0  ;;  %v4486_v27 = vld [vmem:[#allocation10 + $0x38] sm:$0xff]  }
 0x1d7   :  { %2930 = vmatmul.mubr.bf16.gmra.mxu0 %v4852_v47  ;;  %v1906_v19 = vpop.f32.mrf.mxu0 }
 0x1d8   :  { %v1843_v55 = vpop.f32.mrf.mxu1  ;;  %2939 = vmatprep.mubr.bf16.mxu0 %v4856_v57 }
 0x1d9   :  { %v1908_v31 = vpop.f32.mrf.mxu0  ;;  %v1844_v62 = vadd.f32 %v1843_v55, %v1781_v6  ;;  %v4437_v55 = vld [vmem:[#allocation8 + $0x2e8] ss:$16 sps:$4 sm:$0xff]  }
 0x1da   :  { %v1845_v58 = vpop.f32.mrf.mxu1 }
 0x1db   :  { %v1846_v60 = vadd.f32 %v1845_v58, %v1783_v30  ;;  %v1910_v0 = vpop.f32.mrf.mxu0  ;;  %v1907_v33 = vadd.f32 %v1906_v19, %v1844_v62  ;;  %v1744_v62 = vadd.f32 %v4889_v11, %v4880_v53 }
 0x1dc   :  { %v1847_v38 = vpop.f32.mrf.mxu1 }
 0x1dd   :  { %v1848_v47 = vadd.f32 %v1847_v38, %v1785_v59  ;;  %v1912_v9 = vpop.f32.mrf.mxu0  ;;  %v1909_v15 = vadd.f32 %v1908_v31, %v1846_v60  ;;  %v1937_v22 = vmax.f32 %v1907_v33, 0.0  ;;  %v4440_v60 = vld [vmem:[#allocation8 + $0x2c8] ss:$16 sps:$4 sm:$0xff]   ;;  %v1801_v38 = vadd.f32 %v4870_v61, %v1738_v39 }
 0x1de   :  { %v1849_v37 = vpop.f32.mrf.mxu1  ;;  %v4443_v61 = vld [vmem:[#allocation8 + $0x2a8] ss:$16 sps:$4 sm:$0xff]  }
 0x1df   :  { %v1911_v57 = vadd.f32 %v1910_v0, %v1848_v47  ;;  %v1850_v52 = vadd.f32 %v1849_v37, %v1787_v2  ;;  %2940 = vmatmul.mubr.bf16.gmra.mxu0 %v4858_v26  ;;  %v1916_v21 = vpop.f32.mrf.mxu0  ;;  %v1938_v10 = vmax.f32 %v1909_v15, 0.0  ;;  %v1740_v26 = vadd.f32 %v1739_v17, %v4880_v53  ;;  %v4445_v47 = vld [vmem:[#allocation8 + $0x2ac] ss:$16 sps:$4 sm:$0xff]   ;;  %v4461_v39 = vld [vmem:[#allocation8 + $0x3e8] ss:$16 sps:$4 sm:$0xff]  }
 0x1e0   :  { %v1853_v20 = vpop.f32.mrf.mxu1 }
 0x1e1   :  { %v1913_v12 = vadd.f32 %v1912_v9, %v1850_v52  ;;  %v1941_v14 = vmax.f32 %v1911_v57, 0.0  ;;  %v1918_v29 = vpop.f32.mrf.mxu0  ;;  %v1854_v40 = vadd.f32 %v1853_v20, %v1791_v32  ;;  %v1803_v43 = vadd.f32 %v4875_v50, %v1740_v26  ;;  %v4446_v32 = vld [vmem:[#allocation8 + $0x288] ss:$16 sps:$4 sm:$0xff]  }
 0x1e2   :  { %v1855_v34 = vpop.f32.mrf.mxu1  ;;  %v1807_v52 = vadd.f32 %v4891_v54, %v1744_v62  ;;  %v4455_v26 = vld [vmem:[#allocation8 + $0x228] ss:$16 sps:$4 sm:$0xff]   ;;  %v4488_v62 = vld [vmem:[#allocation10 + $0x30] sm:$0xff]  }
 0x1e3   :  { %v1942_v24 = vmax.f32 %v1913_v12, 0.0  ;;  %v1856_v36 = vadd.f32 %v1855_v34, %v1793_v28  ;;  %v1920_v45 = vpop.f32.mrf.mxu0  ;;  %v4910_v41 = vpack.c.bf16 %v1941_v14, %v1937_v22  ;;  %v1917_v31 = vadd.f32 %v1916_v21, %v1854_v40  ;;  %v4451_v34 = vld [vmem:[#allocation8 + $0x26c] ss:$16 sps:$4 sm:$0xff]  }
 0x1e4   :  { %v1857_v42 = vpop.f32.mrf.mxu1  ;;  %v4454_v40 = vld [vmem:[#allocation8 + $0x24c] ss:$16 sps:$4 sm:$0xff]  }
 0x1e5   :  { %v4906_v8 = vpack.c.bf16 %v1942_v24, %v1938_v10  ;;  %v1858_v3 = vadd.f32 %v1857_v42, %v1795_v35  ;;  %v1922_v19 = vpop.f32.mrf.mxu0  ;;  %v1919_v30 = vadd.f32 %v1918_v29, %v1856_v36  ;;  %v1945_v13 = vmax.f32 %v1917_v31, 0.0  ;;  %v4449_v36 = vld [vmem:[#allocation8 + $0x268] ss:$16 sps:$4 sm:$0xff]  }
 0x1e6   :  { %v1859_v7 = vpop.f32.mrf.mxu1  ;;  %v4452_v42 = vld [vmem:[#allocation8 + $0x248] ss:$16 sps:$4 sm:$0xff]  }
 0x1e7   :  { %v1860_v6 = vadd.f32 %v1859_v7, %v1797_v23  ;;  %v1921_v58 = vadd.f32 %v1920_v45, %v1858_v3  ;;  %2856 = vmatprep.mubr.bf16.mxu1 %v4906_v8  ;;  %v1926_v51 = vpop.f32.mrf.mxu0  ;;  %v1946_v37 = vmax.f32 %v1919_v30, 0.0  ;;  %v4457_v45 = vld [vmem:[#allocation8 + $0x22c] ss:$16 sps:$4 sm:$0xff]   ;;  %v4458_v3 = vld [vmem:[#allocation8 + $0x208] ss:$16 sps:$4 sm:$0xff]  }
 0x1e8   :  { %v1863_v17 = vpop.f32.mrf.mxu1  ;;  %2857 = vmatmul.mubr.bf16.vlgmr.msra.gmra.mxu1 %v4910_v41  ;;  %v4460_v23 = vld [vmem:[#allocation8 + $0x20c] ss:$16 sps:$4 sm:$0xff]   ;;  %v4473_v31 = vld [vmem:[#allocation8 + $0x368] ss:$16 sps:$4 sm:$0xff]  }
 0x1e9   :  { %v1923_v59 = vadd.f32 %v1922_v19, %v1860_v6  ;;  %2951 = vmatpush1.bf16.msra.mxu1 %v4437_v55  ;;  %v1949_v0 = vmax.f32 %v1921_v58, 0.0  ;;  %v1928_v2 = vpop.f32.mrf.mxu0  ;;  %v1864_v50 = vadd.f32 %v1863_v17, %v1801_v38  ;;  %v4463_v55 = vld [vmem:[#allocation8 + $0x3ec] ss:$16 sps:$4 sm:$0xff]   ;;  %v4464_v19 = vld [vmem:[#allocation8 + $0x3c8] ss:$16 sps:$4 sm:$0xff]  }
 0x1ea   :  { %v1865_v44 = vpop.f32.mrf.mxu1  ;;  %2952 = vmatprep.subr.bf16.mxu1 %v4442_v56  ;;  %v4466_v7 = vld [vmem:[#allocation8 + $0x3cc] ss:$16 sps:$4 sm:$0xff]   ;;  %v4470_v6 = vld [vmem:[#allocation8 + $0x388] ss:$16 sps:$4 sm:$0xff]  }
 0x1eb   :  { %v1950_v9 = vmax.f32 %v1923_v59, 0.0  ;;  %v1866_v48 = vadd.f32 %v1865_v44, %v1803_v43  ;;  %v1930_v57 = vpop.f32.mrf.mxu0  ;;  %v4924_v11 = vpack.c.bf16 %v1949_v0, %v1945_v13  ;;  %v1927_v5 = vadd.f32 %v1926_v51, %v1864_v50  ;;  %v4469_v56 = vld [vmem:[#allocation8 + $0x3ac] ss:$16 sps:$4 sm:$0xff]   ;;  %v4476_v43 = vld [vmem:[#allocation8 + $0x348] ss:$16 sps:$4 sm:$0xff]   ;;  %v4487_v59 = vld [vmem:[#allocation10 + $0x70] sm:$0xff]  }
 0x1ec   :  { %v1867_v15 = vpop.f32.mrf.mxu1  ;;  %v4472_v30 = vld [vmem:[#allocation8 + $0x38c] ss:$16 sps:$4 sm:$0xff]   ;;  %v4479_v38 = vld [vmem:[#allocation8 + $0x328] ss:$16 sps:$4 sm:$0xff]   ;;  %v4495_v13 = vld [vmem:[#allocation10 + $0x50] sm:$0xff]  }
 0x1ed   :  { %v4922_v33 = vpack.c.bf16 %v1950_v9, %v1946_v37  ;;  %v1868_v53 = vadd.f32 %v1867_v15, %v1805_v18  ;;  %2953 = vmatpush1.bf16.msra.mxu1 %v4440_v60  ;;  %v1932_v21 = vpop.f32.mrf.mxu0  ;;  %v1929_v25 = vadd.f32 %v1928_v2, %v1866_v48  ;;  %v1953_v10 = vmax.f32 %v1927_v5, 0.0  ;;  %v4475_v58 = vld [vmem:[#allocation8 + $0x36c] ss:$16 sps:$4 sm:$0xff]   ;;  %v4491_v18 = vld [vmem:[#allocation10 + $0x60] sm:$0xff]   ;;  %v4496_v50 = vld [vmem:[#allocation10 + $0x10] sm:$0xff]  }
 0x1ee   :  { %v1869_v20 = vpop.f32.mrf.mxu1  ;;  %2954 = vmatprep.subr.bf16.mxu1 %v4445_v47  ;;  %v4485_v17 = vld [vmem:[#allocation10 + $0x78] sm:$0xff]   ;;  %v4489_v0 = vld [vmem:[#allocation10 + $0x68] sm:$0xff]   ;;  %v4492_v37 = vld [vmem:[#allocation10 + $0x20] sm:$0xff]  }
 0x1ef   :  { %v1870_v28 = vadd.f32 %v1869_v20, %v1807_v52  ;;  %v1931_v12 = vadd.f32 %v1930_v57, %v1868_v53  ;;  %2866 = vmatprep.mubr.bf16.mxu1 %v4922_v33  ;;  %v1954_v29 = vmax.f32 %v1929_v25, 0.0  ;;  %v4478_v51 = vld [vmem:[#allocation8 + $0x34c] ss:$16 sps:$4 sm:$0xff]   ;;  %3888 = vmatprep.subr.bf16.mxu0 %v4485_v17  ;;  %v4482_v47 = vld [vmem:[#allocation8 + $0x308] ss:$16 sps:$4 sm:$0xff]   ;;  %v4499_v52 = vld [vmem:[#allocation10 + $0x40] sm:$0xff]  }
 0x1f0   :  { %2867 = vmatmul.mubr.bf16.gmra.mxu1 %v4924_v11  ;;  %3889 = vmatpush3.bf16.msra.mxu0 %v4486_v27  ;;  %v4481_v60 = vld [vmem:[#allocation8 + $0x32c] ss:$16 sps:$4 sm:$0xff]   ;;  %v4500_v53 = vld [vmem:[#allocation10] sm:$0xff]   ;;  %v4504_v20 = vld [vmem:[#allocation10 + $0xb0] sm:$0xff]  }
 0x1f1   :  { %v1933_v54 = vadd.f32 %v1932_v21, %v1870_v28  ;;  %2955 = vmatpush1.bf16.msra.mxu1 %v4443_v61  ;;  %v1957_v14 = vmax.f32 %v1931_v12, 0.0  ;;  %3890 = vmatprep.subr.bf16.mxu0 %v4487_v59  ;;  %v4484_v44 = vld [vmem:[#allocation8 + $0x30c] ss:$16 sps:$4 sm:$0xff]   ;;  %v4503_v61 = vld [vmem:[#allocation10 + $0xf0] sm:$0xff]   ;;  %v4508_v25 = vld [vmem:[#allocation10 + $0xa0] sm:$0xff]  }
 0x1f2   :  { %2956 = vmatprep.subr.bf16.mxu1 %v4448_v63  ;;  %v4490_v2 = vld [vmem:[#allocation10 + $0x28] sm:$0xff]   ;;  %v4493_v9 = vld [vmem:[#allocation10 + $0x58] sm:$0xff]   ;;  %v4511_v5 = vld [vmem:[#allocation10 + $0xd0] sm:$0xff]  }
 0x1f3   :  { %v1958_v35 = vmax.f32 %v1933_v54, 0.0  ;;  %v4930_v22 = vpack.c.bf16 %v1957_v14, %v1953_v10  ;;  %v4494_v48 = vld [vmem:[#allocation10 + $0x18] sm:$0xff]   ;;  %v4497_v15 = vld [vmem:[#allocation10 + $0x48] sm:$0xff]   ;;  %v4512_v54 = vld [vmem:[#allocation10 + $0x90] sm:$0xff]  }
 0x1f4   :  { %3891 = vmatpush3.bf16.msra.mxu0 %v4488_v62  ;;  %v4498_v57 = vld [vmem:[#allocation10 + $0x8] sm:$0xff]   ;;  %v4509_v28 = vld [vmem:[#allocation10 + $0xd8] sm:$0xff]  }
 0x1f5   :  { %v4928_v24 = vpack.c.bf16 %v1958_v35, %v1954_v29  ;;  %2957 = vmatpush1.bf16.msra.mxu1 %v4446_v32  ;;  %3892 = vmatprep.subr.bf16.mxu0 %v4489_v0  ;;  %v4505_v21 = vld [vmem:[#allocation10 + $0xe8] sm:$0xff]   ;;  %v4510_v12 = vld [vmem:[#allocation10 + $0x98] sm:$0xff]   ;;  %v4516_v29 = vld [vmem:[#allocation10 + $0x80] sm:$0xff]  }
 0x1f6   :  { %2958 = vmatprep.subr.bf16.mxu1 %v4451_v34  ;;  %v4506_v63 = vld [vmem:[#allocation10 + $0xa8] sm:$0xff]   ;;  %v4515_v34 = vld [vmem:[#allocation10 + $0xc0] sm:$0xff]  }
 0x1f7   :  { %2876 = vmatprep.mubr.bf16.mxu1 %v4928_v24  ;;  %v4513_v32 = vld [vmem:[#allocation10 + $0xc8] sm:$0xff]  }
 0x1f8   :  { %2877 = vmatmul.mubr.bf16.gmra.mxu1 %v4930_v22  ;;  %3893 = vmatpush3.bf16.msra.mxu0 %v4490_v2  ;;  %v4514_v14 = vld [vmem:[#allocation10 + $0x88] sm:$0xff]  }
 0x1f9   :  { %2959 = vmatpush1.bf16.msra.mxu1 %v4449_v36  ;;  %2982 = vmatprep.mubr.bf16.mxu1 %v4906_v8  ;;  %v4467_v8 = vld [vmem:[#allocation8 + $0x3a8] ss:$16 sps:$4 sm:$0xff]  }
 0x1fa   :  { %2960 = vmatprep.subr.bf16.mxu1 %v4454_v40  ;;  %3894 = vmatprep.subr.bf16.mxu0 %v4491_v18 }
 0x1fc   :  { %3895 = vmatpush3.bf16.msra.mxu0 %v4492_v37 }
 0x1fd   :  { %2961 = vmatpush1.bf16.msra.mxu1 %v4452_v42  ;;  %3896 = vmatprep.subr.bf16.mxu0 %v4493_v9  ;;  %v4943_v42 = vld [vmem:[%s4970_s4] sm:$0xf] }
 0x1fe   :  { %2962 = vmatprep.subr.bf16.mxu1 %v4457_v45 }
 0x200   :  { %3897 = vmatpush3.bf16.msra.mxu0 %v4494_v48 }
 0x201   :  { %2963 = vmatpush1.bf16.msra.mxu1 %v4455_v26  ;;  %3898 = vmatprep.subr.bf16.mxu0 %v4495_v13  ;;  %v2108_v26 = vrot.slane %v4943_v42, %v322_v4 }
 0x202   :  { %2964 = vmatprep.subr.bf16.mxu1 %v4460_v23  ;;  %v2104_v23 = vrot.slane %v4943_v42, %v318_v49 }
 0x204   :  { %3899 = vmatpush3.bf16.msra.mxu0 %v4496_v50 }
 0x205   :  { %2965 = vmatpush1.bf16.msra.mxu1 %v4458_v3  ;;  %3900 = vmatprep.subr.bf16.mxu0 %v4497_v15 }
 0x206   :  { %2966 = vmatprep.subr.bf16.mxu1 %v4463_v55 }
 0x208   :  { %3901 = vmatpush3.bf16.msra.mxu0 %v4498_v57 }
 0x209   :  { %2967 = vmatpush2.bf16.msra.mxu1 %v4461_v39  ;;  %3902 = vmatprep.subr.bf16.mxu0 %v4499_v52 }
 0x20a   :  { %2968 = vmatprep.subr.bf16.mxu1 %v4466_v7 }
 0x20c   :  { %3903 = vmatpush3.bf16.msra.mxu0 %v4500_v53 }
 0x20d   :  { %2969 = vmatpush2.bf16.msra.mxu1 %v4464_v19 }
 0x20e   :  { %2970 = vmatprep.subr.bf16.mxu1 %v4469_v56 }
 0x211   :  { %2971 = vmatpush2.bf16.msra.mxu1 %v4467_v8 }
 0x212   :  { %2972 = vmatprep.subr.bf16.mxu1 %v4472_v30 }
 0x215   :  { %2973 = vmatpush2.bf16.msra.mxu1 %v4470_v6 }
 0x216   :  { %2974 = vmatprep.subr.bf16.mxu1 %v4475_v58 }
 0x219   :  { %2975 = vmatpush2.bf16.msra.mxu1 %v4473_v31 }
 0x21a   :  { %2976 = vmatprep.subr.bf16.mxu1 %v4478_v51 }
 0x21d   :  { %2977 = vmatpush2.bf16.msra.mxu1 %v4476_v43 }
 0x21e   :  { %2978 = vmatprep.subr.bf16.mxu1 %v4481_v60 }
 0x221   :  { %2979 = vmatpush2.bf16.msra.mxu1 %v4479_v38 }
 0x222   :  { %2980 = vmatprep.subr.bf16.mxu1 %v4484_v44 }
 0x225   :  { %2981 = vmatpush2.bf16.msra.mxu1 %v4482_v47 }
 0x228   :  { %2983 = vmatmul.mubr.bf16.vlgmr.msra.gmra.mxu1 %v4910_v41  ;;  %v4501_v41 = vld [vmem:[#allocation10 + $0xf8] sm:$0xff]  }
 0x229   :  { %2992 = vmatprep.mubr.bf16.mxu1 %v4922_v33  ;;  %v4502_v33 = vld [vmem:[#allocation10 + $0xb8] sm:$0xff]   ;;  %3922 = vmatprep.subr.bf16.mxu1 %v4501_v41 }
 0x22a   :  { %3923 = vmatpush3.bf16.msra.mxu1 %v4502_v33 }
 0x22b   :  { %3924 = vmatprep.subr.bf16.mxu1 %v4503_v61 }
 0x22e   :  { %3925 = vmatpush3.bf16.msra.mxu1 %v4504_v20 }
 0x22f   :  { %3926 = vmatprep.subr.bf16.mxu1 %v4505_v21 }
 0x230   :  { %2993 = vmatmul.mubr.bf16.gmra.mxu1 %v4924_v11  ;;  %v4507_v11 = vld [vmem:[#allocation10 + $0xe0] sm:$0xff]  }
 0x231   :  { %3002 = vmatprep.mubr.bf16.mxu1 %v4928_v24 }
 0x232   :  { %3927 = vmatpush3.bf16.msra.mxu1 %v4506_v63 }
 0x233   :  { %3928 = vmatprep.subr.bf16.mxu1 %v4507_v11 }
 0x236   :  { %3929 = vmatpush3.bf16.msra.mxu1 %v4508_v25 }
 0x237   :  { %3930 = vmatprep.subr.bf16.mxu1 %v4509_v28 }
 0x238   :  { %3003 = vmatmul.mubr.bf16.gmra.mxu1 %v4930_v22 }
 0x23a   :  { %3931 = vmatpush3.bf16.msra.mxu1 %v4510_v12 }
 0x23b   :  { %3932 = vmatprep.subr.bf16.mxu1 %v4511_v5 }
 0x23e   :  { %3933 = vmatpush3.bf16.msra.mxu1 %v4512_v54 }
 0x23f   :  { %3934 = vmatprep.subr.bf16.mxu1 %v4513_v32 }
 0x242   :  { %3935 = vmatpush3.bf16.msra.mxu1 %v4514_v14 }
 0x243   :  { %3936 = vmatprep.subr.bf16.mxu1 %v4515_v34 }
 0x246   :  { %3937 = vmatpush3.bf16.msra.mxu1 %v4516_v29 }
 0x24f   :  { %v2795_v35 = vpop.f32.mrf.mxu0 }
 0x250   :  { %v2796_v56 = vadd.f32 %v2795_v35, %v2104_v23 }
 0x251   :  { %v2797_v10 = vpop.f32.mrf.mxu0 }
 0x252   :  { %v2798_v7 = vadd.f32 %v2797_v10, %v2108_v26 }
 0x253   :  { %v2799_v24 = vpop.f32.mrf.mxu0 }
 0x254   :  { %v2800_v19 = vadd.f32 %v2799_v24, %v2104_v23 }
 0x255   :  { %v2801_v36 = vpop.f32.mrf.mxu0 }
 0x256   :  { %v2802_v30 = vadd.f32 %v2801_v36, %v2108_v26 }
 0x257   :  { %v2805_v22 = vpop.f32.mrf.mxu0 }
 0x258   :  { %v2806_v47 = vadd.f32 %v2805_v22, %v2104_v23 }
 0x259   :  { %v2807_v40 = vpop.f32.mrf.mxu0 }
 0x25a   :  { %v2808_v0 = vadd.f32 %v2807_v40, %v2108_v26 }
 0x25b   :  { %v2809_v45 = vpop.f32.mrf.mxu0 }
 0x25c   :  { %v2810_v44 = vadd.f32 %v2809_v45, %v2104_v23 }
 0x25d   :  { %v2811_v55 = vpop.f32.mrf.mxu0 }
 0x25e   :  { %v2812_v9 = vadd.f32 %v2811_v55, %v2108_v26 }
 0x25f   :  { %v2815_v31 = vpop.f32.mrf.mxu0 }
 0x260   :  { %v2816_v12 = vadd.f32 %v2815_v31, %v2104_v23 }
 0x261   :  { %v2817_v62 = vpop.f32.mrf.mxu0 }
 0x262   :  { %v2818_v11 = vadd.f32 %v2817_v62, %v2108_v26 }
 0x263   :  { %v2819_v50 = vpop.f32.mrf.mxu0 }
 0x264   :  { %v2820_v25 = vadd.f32 %v2819_v50, %v2104_v23 }
 0x265   :  { %v2821_v20 = vpop.f32.mrf.mxu0 }
 0x266   :  { %v2822_v32 = vadd.f32 %v2821_v20, %v2108_v26 }
 0x28f   :  { %v2921_v55 = vpop.f32.mrf.mxu0 }
 0x291   :  { %v2923_v23 = vpop.f32.mrf.mxu0 }
 0x2a8   :  { %v2858_v3 = vpop.f32.mrf.mxu1 }
 0x2a9   :  { %v2859_v17 = vadd.f32 %v2858_v3, %v2796_v56 }
 0x2aa   :  { %v2860_v39 = vpop.f32.mrf.mxu1 }
 0x2ab   :  { %v2861_v6 = vadd.f32 %v2860_v39, %v2798_v7  ;;  %v3013_v49 = vmax.f32 %v2859_v17, 0.0  ;;  %v2925_v39 = vpop.f32.mrf.mxu0 }
 0x2ac   :  { %v2862_v8 = vpop.f32.mrf.mxu1 }
 0x2ad   :  { %v2863_v58 = vadd.f32 %v2862_v8, %v2800_v19  ;;  %v3014_v59 = vmax.f32 %v2861_v6, 0.0  ;;  %v2927_v7 = vpop.f32.mrf.mxu0  ;;  %v2116_v8 = vrot.slane %v4943_v42, %v330_v46 }
 0x2ae   :  { %v2864_v51 = vpop.f32.mrf.mxu1 }
 0x2af   :  { %v2865_v27 = vadd.f32 %v2864_v51, %v2802_v30  ;;  %v3017_v43 = vmax.f32 %v2863_v58, 0.0  ;;  %v2931_v26 = vpop.f32.mrf.mxu0  ;;  %v2112_v30 = vrot.slane %v4943_v42, %v326_v16  ;;  %v2924_v17 = vadd.f32 %v2923_v23, %v2116_v8 }
 0x2b0   :  { %v2868_v4 = vpop.f32.mrf.mxu1 }
 0x2b1   :  { %v3018_v60 = vmax.f32 %v2865_v27, 0.0  ;;  %v3037_v18 = vpack.c.bf16 %v3017_v43, %v3013_v49  ;;  %v2869_v15 = vadd.f32 %v2868_v4, %v2806_v47  ;;  %v2933_v19 = vpop.f32.mrf.mxu0  ;;  %v2926_v51 = vadd.f32 %v2925_v39, %v2112_v30 }
 0x2b2   :  { %v2870_v38 = vpop.f32.mrf.mxu1  ;;  %v2922_v27 = vadd.f32 %v2921_v55, %v2112_v30  ;;  %v2928_v4 = vadd.f32 %v2927_v7, %v2116_v8 }
 0x2b3   :  { %v3038_v2 = vpack.c.bf16 %v3018_v60, %v3014_v59  ;;  %v2871_v48 = vadd.f32 %v2870_v38, %v2808_v0  ;;  %v3021_v21 = vmax.f32 %v2869_v15, 0.0  ;;  %v2935_v56 = vpop.f32.mrf.mxu0 }
 0x2b4   :  { %v2872_v37 = vpop.f32.mrf.mxu1 }
 0x2b5   :  { %v2873_v13 = vadd.f32 %v2872_v37, %v2810_v44  ;;  %3344 = vmatprep.mubr.bf16.mxu0 %v3038_v2  ;;  %v3022_v33 = vmax.f32 %v2871_v48, 0.0  ;;  %v2937_v58 = vpop.f32.mrf.mxu0  ;;  %v2936_v37 = vadd.f32 %v2935_v56, %v2112_v30  ;;  %v2932_v48 = vadd.f32 %v2931_v26, %v2112_v30 }
 0x2b6   :  { %v2874_v57 = vpop.f32.mrf.mxu1  ;;  %3345 = vmatmul.mubr.bf16.vlgmr.msra.gmra.mxu0 %v3037_v18  ;;  %v2934_v18 = vadd.f32 %v2933_v19, %v2116_v8  ;;  %v2938_v15 = vadd.f32 %v2937_v58, %v2116_v8 }
 0x2b7   :  { %v2875_v52 = vadd.f32 %v2874_v57, %v2812_v9  ;;  %v3025_v53 = vmax.f32 %v2873_v13, 0.0  ;;  %v2941_v62 = vpop.f32.mrf.mxu0 }
 0x2b8   :  { %v2878_v41 = vpop.f32.mrf.mxu1 }
 0x2b9   :  { %v3026_v61 = vmax.f32 %v2875_v52, 0.0  ;;  %v3041_v5 = vpack.c.bf16 %v3025_v53, %v3021_v21  ;;  %v2879_v29 = vadd.f32 %v2878_v41, %v2816_v12  ;;  %v2943_v47 = vpop.f32.mrf.mxu0 }
 0x2ba   :  { %v2880_v63 = vpop.f32.mrf.mxu1 }
 0x2bb   :  { %v3042_v28 = vpack.c.bf16 %v3026_v61, %v3022_v33  ;;  %v2881_v14 = vadd.f32 %v2880_v63, %v2818_v11  ;;  %v3029_v40 = vmax.f32 %v2879_v29, 0.0  ;;  %v2945_v53 = vpop.f32.mrf.mxu0 }
 0x2bc   :  { %v2882_v54 = vpop.f32.mrf.mxu1 }
 0x2bd   :  { %v2883_v34 = vadd.f32 %v2882_v54, %v2820_v25  ;;  %3352 = vmatprep.mubr.bf16.mxu0 %v3042_v28  ;;  %v3030_v36 = vmax.f32 %v2881_v14, 0.0  ;;  %v2947_v25 = vpop.f32.mrf.mxu0  ;;  %v2946_v54 = vadd.f32 %v2945_v53, %v2112_v30  ;;  %v2942_v14 = vadd.f32 %v2941_v62, %v2112_v30 }
 0x2be   :  { %v2884_v35 = vpop.f32.mrf.mxu1  ;;  %3353 = vmatmul.mubr.bf16.gmra.mxu0 %v3041_v5  ;;  %v2944_v5 = vadd.f32 %v2943_v47, %v2116_v8 }
 0x2bf   :  { %v2885_v10 = vadd.f32 %v2884_v35, %v2822_v32  ;;  %v3033_v24 = vmax.f32 %v2883_v34, 0.0  ;;  %v2948_v35 = vadd.f32 %v2947_v25, %v2116_v8 }
 0x2c1   :  { %v3034_v22 = vmax.f32 %v2885_v10, 0.0  ;;  %v3045_v3 = vpack.c.bf16 %v3033_v24, %v3029_v40 }
 0x2c3   :  { %v3046_v45 = vpack.c.bf16 %v3034_v22, %v3030_v36 }
 0x2c5   :  { %3360 = vmatprep.mubr.bf16.mxu0 %v3046_v45 }
 0x2c6   :  { %3361 = vmatmul.mubr.bf16.gmra.mxu0 %v3045_v3 }
 0x2e8   :  { %v2984_v6 = vpop.f32.mrf.mxu1 }
 0x2e9   :  { %v2985_v49 = vadd.f32 %v2984_v6, %v2922_v27 }
 0x2ea   :  { %v2986_v31 = vpop.f32.mrf.mxu1 }
 0x2eb   :  { %v2987_v59 = vadd.f32 %v2986_v31, %v2924_v17  ;;  %v3015_v16 = vmax.f32 %v2985_v49, 0.0 }
 0x2ec   :  { %v2988_v43 = vpop.f32.mrf.mxu1 }
 0x2ed   :  { %v2989_v60 = vadd.f32 %v2988_v43, %v2926_v51  ;;  %v3016_v2 = vmax.f32 %v2987_v59, 0.0 }
 0x2ee   :  { %v2990_v38 = vpop.f32.mrf.mxu1 }
 0x2ef   :  { %v2991_v0 = vadd.f32 %v2990_v38, %v2928_v4  ;;  %v3019_v44 = vmax.f32 %v2989_v60, 0.0  ;;  %v3826_v4 = vld [vmem:[%s4972_s6] ss:$0 sm:$0xff]  ;;  %s4665_s6 = smov [#allocation11]  }
 0x2f0   :  { %v2994_v46 = vpop.f32.mrf.mxu1  ;;  %s3461_s30 = sshll.u32 %s4665_s6, 4  ;;  %s3462_s30 = int_to_ptr.vmem [resolvable:$true] %s3461_s30 }
 0x2f1   :  { %v3020_v1 = vmax.f32 %v2991_v0, 0.0  ;;  %v3039_v13 = vpack.c.bf16 %v3019_v44, %v3015_v16  ;;  %v2995_v41 = vadd.f32 %v2994_v46, %v2932_v48  ;;  %s4625_s8 = scalar_lea.vmem %s3462_s30, 384  ;;  %p4630_p12 = scmp.lt.s32.totalorder %s3462_s30, %s3462_s30 }
 0x2f2   :  { %v2996_v42 = vpop.f32.mrf.mxu1  ;;  %p4626_p11 = scmp.ne.s32.totalorder %s3462_s30, %s4625_s8  ;;  %p4631_p13 = scmp.lt.s32.totalorder %s4625_s8, %s4625_s8 }
 0x2f3   :  { %v3040_v9 = vpack.c.bf16 %v3020_v1, %v3016_v2  ;;  %v2997_v57 = vadd.f32 %v2996_v42, %v2934_v18  ;;  %v3023_v28 = vmax.f32 %v2995_v41, 0.0 }
 0x2f4   :  { %v2998_v50 = vpop.f32.mrf.mxu1  ;;  %p4632_p0 = por %p4631_p13, %p4630_p12 }
 0x2f5   :  { %v2999_v52 = vadd.f32 %v2998_v50, %v2936_v37  ;;  %3401 = vmatprep.mubr.bf16.mxu1 %v3040_v9  ;;  %v3024_v63 = vmax.f32 %v2997_v57, 0.0 }
 0x2f6   :  { %v3000_v33 = vpop.f32.mrf.mxu1  ;;  %3402 = vmatmul.mubr.bf16.vlgmr.msra.gmra.mxu1 %v3039_v13  ;;  %p4633_p1 = pnand %p4632_p0, %p4626_p11 }
 0x2f7   :  { %v3001_v61 = vadd.f32 %v3000_v33, %v2938_v15  ;;  %v3027_v20 = vmax.f32 %v2999_v52, 0.0 }
 0x2f8   :  { %v3004_v21 = vpop.f32.mrf.mxu1 }
 0x2f9   :  { %v3028_v11 = vmax.f32 %v3001_v61, 0.0  ;;  %v3043_v34 = vpack.c.bf16 %v3027_v20, %v3023_v28  ;;  %v3005_v36 = vadd.f32 %v3004_v21, %v2942_v14 }
 0x2fa   :  { %v3006_v12 = vpop.f32.mrf.mxu1 }
 0x2fb   :  { %v3044_v32 = vpack.c.bf16 %v3028_v11, %v3024_v63  ;;  %v3007_v10 = vadd.f32 %v3006_v12, %v2944_v5  ;;  %v3031_v23 = vmax.f32 %v3005_v36, 0.0 }
 0x2fc   :  { %v3008_v29 = vpop.f32.mrf.mxu1 }
 0x2fd   :  { %v3009_v24 = vadd.f32 %v3008_v29, %v2946_v54  ;;  %3409 = vmatprep.mubr.bf16.mxu1 %v3044_v32  ;;  %v3032_v3 = vmax.f32 %v3007_v10, 0.0 }
 0x2fe   :  { %v3010_v22 = vpop.f32.mrf.mxu1  ;;  %3410 = vmatmul.mubr.bf16.gmra.mxu1 %v3043_v34 }
 0x2ff   :  { %v3011_v40 = vadd.f32 %v3010_v22, %v2948_v35  ;;  %v3035_v45 = vmax.f32 %v3009_v24, 0.0 }
 0x301   :  { %v3036_v55 = vmax.f32 %v3011_v40, 0.0  ;;  %v3047_v7 = vpack.c.bf16 %v3035_v45, %v3031_v23 }
 0x303   :  { %v3048_v39 = vpack.c.bf16 %v3036_v55, %v3032_v3 }
 0x305   :  { %3417 = vmatprep.mubr.bf16.mxu1 %v3048_v39 }
 0x306   :  { %3418 = vmatmul.mubr.bf16.gmra.mxu1 %v3047_v7 }
 0x376   :  { %v3904_v26 = vpop.f32.mrf.mxu0 }
 0x378   :  { %v3905_v19 = vpop.f32.mrf.mxu0 }
 0x379   :  { %v3906_v27 = vadd.f32 %v3905_v19, %v3904_v26 }
 0x37a   :  { %v3907_v56 = vpop.f32.mrf.mxu0 }
 0x37b   :  { %v3347_v38 = vadd.f32 %v3906_v27, %v3826_v4 }
 0x37c   :  { %v3908_v30 = vpop.f32.mrf.mxu0 }
 0x37d   :  { %v3909_v43 = vadd.f32 %v3908_v30, %v3907_v56 }
 0x37e   :  { %v3910_v8 = vpop.f32.mrf.mxu0 }
 0x37f   :  { %v3350_v0 = vadd.f32 %v3909_v43, %v3826_v4 }
 0x380   :  { %v3911_v6 = vpop.f32.mrf.mxu0 }
 0x381   :  { %v3912_v42 = vadd.f32 %v3911_v6, %v3910_v8 }
 0x382   :  { %v3913_v58 = vpop.f32.mrf.mxu0 }
 0x383   :  { %v3355_v15 = vadd.f32 %v3912_v42, %v3826_v4 }
 0x384   :  { %v3914_v31 = vpop.f32.mrf.mxu0 }
 0x385   :  { %v3915_v18 = vadd.f32 %v3914_v31, %v3913_v58 }
 0x386   :  { %v3916_v59 = vpop.f32.mrf.mxu0 }
 0x387   :  { %v3358_v57 = vadd.f32 %v3915_v18, %v3826_v4 }
 0x388   :  { %v3917_v46 = vpop.f32.mrf.mxu0 }
 0x389   :  { %v3918_v21 = vadd.f32 %v3917_v46, %v3916_v59 }
 0x38a   :  { %v3919_v9 = vpop.f32.mrf.mxu0 }
 0x38b   :  { %v3363_v5 = vadd.f32 %v3918_v21, %v3826_v4 }
 0x38c   :  { %v3920_v53 = vpop.f32.mrf.mxu0 }
 0x38d   :  { %v3921_v63 = vadd.f32 %v3920_v53, %v3919_v9 }
 0x38f   :  { %v3366_v54 = vadd.f32 %v3921_v63, %v3826_v4 }
 0x3b6   :  { %v3938_v17 = vpop.f32.mrf.mxu1 }
 0x3b8   :  { %v3939_v51 = vpop.f32.mrf.mxu1 }
 0x3b9   :  { %v3940_v62 = vadd.f32 %v3939_v51, %v3938_v17 }
 0x3ba   :  { %v3941_v60 = vpop.f32.mrf.mxu1 }
 0x3bb   :  { %v3404_v1 = vadd.f32 %v3940_v62, %v3347_v38 }
 0x3bc   :  { %v3942_v49 = vpop.f32.mrf.mxu1 }
 0x3bd   :  { %v3943_v44 = vadd.f32 %v3942_v49, %v3941_v60 }
 0x3be   :  { %v3944_v2 = vpop.f32.mrf.mxu1 }
 0x3bf   :  { %v3407_v47 = vadd.f32 %v3943_v44, %v3350_v0 }
 0x3c0   :  { %v3945_v16 = vpop.f32.mrf.mxu1 }
 0x3c1   :  { %v3874_v37 = vpack.c.bf16 %v3407_v47, %v3404_v1  ;;  %v3946_v13 = vadd.f32 %v3945_v16, %v3944_v2 }
 0x3c2   :  { %v3947_v48 = vpop.f32.mrf.mxu1 }
 0x3c3   :  { %3875 = vst [vmem:[#allocation11] sm:$0xff] %v3874_v37   ;;  %v3412_v33 = vadd.f32 %v3946_v13, %v3355_v15 }
 0x3c4   :  { %v3948_v50 = vpop.f32.mrf.mxu1 }
 0x3c5   :  { %v3949_v52 = vadd.f32 %v3948_v50, %v3947_v48 }
 0x3c6   :  { %v3950_v41 = vpop.f32.mrf.mxu1 }
 0x3c7   :  { %v3415_v61 = vadd.f32 %v3949_v52, %v3358_v57 }
 0x3c8   :  { %v3951_v20 = vpop.f32.mrf.mxu1 }
 0x3c9   :  { %v3879_v11 = vpack.c.bf16 %v3415_v61, %v3412_v33  ;;  %v3952_v28 = vadd.f32 %v3951_v20, %v3950_v41 }
 0x3ca   :  { %v3953_v25 = vpop.f32.mrf.mxu1 }
 0x3cb   :  { %3886 = vst [vmem:[#allocation11 + $0x8] sm:$0xff] %v3879_v11   ;;  %v3420_v14 = vadd.f32 %v3952_v28, %v3363_v5 }
 0x3cc   :  { %v3954_v12 = vpop.f32.mrf.mxu1 }
 0x3cd   :  { %v3955_v32 = vadd.f32 %v3954_v12, %v3953_v25 }
 0x3cf   :  { %v3423_v34 = vadd.f32 %v3955_v32, %v3366_v54 }
 0x3d1   :  { %v3884_v29 = vpack.c.bf16 %v3423_v34, %v3420_v14 }
 0x3d3   :  { %3887 = vst [vmem:[#allocation11 + $0x10] sm:$0xff] %v3884_v29  }
 0x3d4   :  { %4636 = shalt.err (!%p4633_p1)
}
 0x3d5   :  { %3467 = dma.vmem_to_hbm [thread:$0]  %s3462_s30, 384, %s4973_s7, [#allocation4], %s4662_s0, %s4662_s0, %s4663_s26  }
 0x3d6   :  { %4651 = dma.done.wait [#allocation4], 384  }
 0x3d7   :  { %4652 = vsyncadd [#allocation4], 4294966912 }
 0x3d8   :  { %3471 = vsyncpa [#allocation3], 1 }
 0x3d9   :  { %3472 = vsyncpa [#allocation6], 1 }
 0x3da   :  { %3473 = vsyncpa [#allocation9], 1 }
 0x3db   :  { %3474 = vsyncpa [#allocation4], 1 }

</bundles_post_ra>
